<compile_context>
chip_gen: v7x
topology: tpu7x:2x2x1
jax: 0.10.0
libtpu: 0.0.40
codegen_flags: <defaults>
</compile_context>

<pallas_src>
import functools
import math

import jax
import jax.numpy as jnp
import numpy as np
from jax.experimental import pallas as pl
from jax.experimental.pallas import tpu as pltpu


def _layer_norm(x, gamma, beta, eps=1e-5):
    mean = jnp.mean(x, axis=-1, keepdims=True)
    var = jnp.mean(jnp.square(x - mean), axis=-1, keepdims=True)
    return (x - mean) * jax.lax.rsqrt(var + eps) * gamma + beta


def qtransformer_kernel(q_ref, a_ref,
                        wq_ref, bq_ref, wkv_ref, bkv_ref,
                        wo_ref, bo_ref,
                        w1_ref, b1_ref, w2_ref, b2_ref,
                        g1_ref, be1_ref, g2_ref, be2_ref,
                        o_ref, *, nhead):
    Bb, Q, D = q_ref.shape
    A = a_ref.shape[1]
    H = nhead
    dk = D // H
    Mq = Bb * Q          # folded query rows
    Ma = Bb * A          # folded key/value rows
    G = H * Bb
    bf16 = jnp.bfloat16
    f32 = jnp.float32

    # ---- folded (rows, D) activations ----
    q2d = q_ref[...].reshape(Mq, D)            # f32, kept for the residual
    a2d = a_ref[...].reshape(Ma, D)

    # ---- wide fused projections (bf16 MXU inputs, f32 accumulation) ----
    # 1/sqrt(dk) is already folded into wq/bq by prepare_params().
    qp = jnp.dot(q2d.astype(bf16), wq_ref[...],
                 preferred_element_type=f32) + bq_ref[...]            # (Mq, D)
    kvp = jnp.dot(a2d.astype(bf16), wkv_ref[...],
                  preferred_element_type=f32) + bkv_ref[...]          # (Ma, 2D)

    # ---- head split for the attention core (static lane slices) ----
    def split_heads(x2d, col0, rows):
        parts = [x2d[:, col0 + h * dk: col0 + (h + 1) * dk][None]     # (1, Bb*rows, dk)
                 for h in range(H)]
        xh = jnp.concatenate(parts, axis=0)                           # (H, Bb*rows, dk)
        return xh.reshape(G, rows, dk).astype(bf16)

    qh = split_heads(qp, 0, Q)       # (G, Q, dk) bf16 (already scaled)
    kh = split_heads(kvp, 0, A)      # (G, A, dk) bf16
    vh = split_heads(kvp, D, A)      # (G, A, dk) bf16

    # ---- scaled dot-product attention, batched over (head, batch-elem) ----
    s = jnp.einsum("gqd,gkd->gqk", qh, kh,
                   preferred_element_type=f32)                        # (G, Q, A) f32
    s = s - jnp.max(s, axis=-1, keepdims=True)
    p = jnp.exp(s)
    denom = jnp.sum(p, axis=-1, keepdims=True)
    probs = (p * pl.reciprocal(denom, approx=True)).astype(bf16)      # EUP slot
    ctx = jnp.einsum("gqk,gkd->gqd", probs, vh,
                     preferred_element_type=f32)                      # (G, Q, dk) f32

    # ---- merge heads back into lanes; single wide output projection ----
    ctxh = ctx.reshape(H, Mq, dk)
    ctx_flat = jnp.concatenate([ctxh[h] for h in range(H)], axis=-1)  # (Mq, D) head-major
    attn_out = jnp.dot(ctx_flat.astype(bf16), wo_ref[...],
                       preferred_element_type=f32) + bo_ref[...]      # (Mq, D)

    # ---- residual + LayerNorm 1 ----
    x = q2d + attn_out
    x = _layer_norm(x, g1_ref[...], be1_ref[...])

    # ---- feed-forward (relu) + residual + LayerNorm 2 ----
    h1 = jnp.dot(x.astype(bf16), w1_ref[...],
                 preferred_element_type=f32) + b1_ref[...]
    h1 = jnp.maximum(h1, 0.0)
    ff = jnp.dot(h1.astype(bf16), w2_ref[...],
                 preferred_element_type=f32) + b2_ref[...]
    x = _layer_norm(x + ff, g2_ref[...], be2_ref[...])

    o_ref[...] = x.reshape(Bb, Q, D).astype(o_ref.dtype)


def _device_kind():
    try:
        return jax.devices()[0].device_kind.lower()
    except Exception:
        return ""


def prepare_params(params, *, nhead):
    """One-time parameter transform (bf16 weights, fused K/V, scale folded)."""
    D = params["wq"].shape[0]
    dk = D // nhead
    scale = 1.0 / math.sqrt(dk)
    bf16, f32 = jnp.bfloat16, jnp.float32
    as_row = lambda v: jnp.asarray(v, f32).reshape(1, -1)
    return {
        "wq": (jnp.asarray(params["wq"], f32) * scale).astype(bf16),   # (D, D)
        "bq": as_row(params["bq"]) * scale,
        "wkv": jnp.concatenate([params["wk"], params["wv"]],
                               axis=1).astype(bf16),                   # (D, 2D)
        "bkv": jnp.concatenate([as_row(params["bk"]), as_row(params["bv"])],
                               axis=1),                                # (1, 2D)
        "wo": jnp.asarray(params["wo"], f32).astype(bf16),
        "bo": as_row(params["bo"]),
        "w1": jnp.asarray(params["w1"], f32).astype(bf16),
        "b1": as_row(params["b1"]),
        "w2": jnp.asarray(params["w2"], f32).astype(bf16),
        "b2": as_row(params["b2"]),
        "g1": as_row(params["g1"]), "be1": as_row(params["be1"]),
        "g2": as_row(params["g2"]), "be2": as_row(params["be2"]),
    }


def qtransformer_layer(query_tokens, all_tokens, prepped, *, nhead,
                       batch_block=None, out_dtype=jnp.float32):
    B, Q, D = query_tokens.shape
    _, A, _ = all_tokens.shape
    dff = prepped["w1"].shape[1]

    kind = _device_kind()
    is_v5e = ("v5 lite" in kind) or ("v5e" in kind)
    is_v7 = "v7" in kind

    def act_working_set(bb_):
        # per-grid-step f32 activation footprint (tokens, projections, scores,
        # FFN intermediate); weights are accounted for separately.
        return (4 * bb_ * (2 * Q + A) * D            # in/out token blocks
                + 4 * bb_ * (Q * D + A * 2 * D)      # qp + kvp
                + 4 * nhead * bb_ * Q * A * 2        # scores + probs
                + 4 * bb_ * Q * dff)                 # FFN intermediate

    # ---- generation-aware batch-block heuristic ----
    if batch_block is None:
        target_rows = 128 if is_v5e else 256         # fill MXU M dimension
        bb = max(1, min(B, -(-target_rows // max(Q, 1))))
        while B % bb:
            bb -= 1
        # v7x megacore: keep grid_b >= 2 so the parallel axis uses both TCs.
        if is_v7 and (B // bb) < 2 and B >= 2:
            bb = max(1, bb // 2)
            while B % bb:
                bb -= 1
        act_budget = 24 * 2**20
        while bb > 1 and act_working_set(bb) > act_budget:
            bb -= 1
            while B % bb:
                bb -= 1
    else:
        bb = batch_block
    assert B % bb == 0
    grid_b = B // bb

    const_keys = ("wq", "bq", "wkv", "bkv", "wo", "bo",
                  "w1", "b1", "w2", "b2", "g1", "be1", "g2", "be2")
    const_args = [prepped[k] for k in const_keys]
    weight_bytes = sum(int(np.prod(a.shape)) * a.dtype.itemsize for a in const_args)

    # ---- explicit VMEM budget (weights + activations + headroom) ----
    vmem_cap = (56 << 20) if is_v7 else (100 << 20)
    vmem_limit = int(min(max(2 * weight_bytes + 2 * act_working_set(bb) + (8 << 20),
                             32 << 20), vmem_cap))

    # Advisory cost estimate so XLA schedules surrounding ops correctly.
    flops = (2 * B * Q * D * D                 # Q projection
             + 2 * B * A * D * 2 * D           # fused K/V projection
             + 2 * 2 * B * Q * A * D           # scores + probs @ V
             + 2 * B * Q * D * D               # output projection
             + 2 * 2 * B * Q * D * dff)        # FFN
    transcendentals = B * nhead * Q * A + B * nhead * Q + 4 * B * Q
    bytes_accessed = (4 * (query_tokens.size + all_tokens.size + B * Q * D)
                      + weight_bytes)

    kernel = functools.partial(qtransformer_kernel, nhead=nhead)

    def const_spec(arr, single_buffer):
        idx = lambda *_args, _n=arr.ndim: (0,) * _n
        if single_buffer and hasattr(pl, "Buffered"):
            try:
                # Constant index map -> fetched once; single-buffer to halve
                # resident weight VMEM (make-or-break on v7x's 64 MiB VMEM).
                return pl.BlockSpec(arr.shape, idx, pipeline_mode=pl.Buffered(1))
            except TypeError:
                pass
        return pl.BlockSpec(arr.shape, idx)

    def build(single_buffer_weights):
        in_specs = ([pl.BlockSpec((bb, Q, D), lambda b: (b, 0, 0)),   # query tokens
                     pl.BlockSpec((bb, A, D), lambda b: (b, 0, 0))]   # all tokens
                    + [const_spec(a, single_buffer_weights) for a in const_args])
        return pl.pallas_call(
            kernel,
            grid=(grid_b,),
            in_specs=in_specs,
            out_specs=pl.BlockSpec((bb, Q, D), lambda b: (b, 0, 0)),
            out_shape=jax.ShapeDtypeStruct((B, Q, D), out_dtype),
            compiler_params=pltpu.CompilerParams(
                dimension_semantics=("parallel",),
                vmem_limit_bytes=vmem_limit),
            cost_estimate=pl.CostEstimate(
                flops=flops, transcendentals=transcendentals,
                bytes_accessed=bytes_accessed),
        )

    args = (query_tokens, all_tokens, *const_args)
    try:
        return jax.block_until_ready(build(True)(*args))
    except Exception:
        # Fallback for JAX versions that reject single-buffered (Buffered(1))
        # constant operands in pallas_call; semantics are identical.
        return build(False)(*args)


def reference_layer(query_tokens, all_tokens, params, *, nhead):
    """Pure-JAX (f32) reference of the same forward pass (for verification)."""
    B, Q, D = query_tokens.shape
    A = all_tokens.shape[1]
    dk = D // nhead

    def proj(x, w, b):
        return jnp.einsum("bsd,df->bsf", x, w) + b

    qp = proj(query_tokens, params["wq"], params["bq"]).reshape(B, Q, nhead, dk)
    kp = proj(all_tokens, params["wk"], params["bk"]).reshape(B, A, nhead, dk)
    vp = proj(all_tokens, params["wv"], params["bv"]).reshape(B, A, nhead, dk)
    scores = jnp.einsum("bqhd,bkhd->bhqk", qp, kp) / math.sqrt(dk)
    probs = jax.nn.softmax(scores, axis=-1)
    ctx = jnp.einsum("bhqk,bkhd->bqhd", probs, vp).reshape(B, Q, D)
    attn_out = proj(ctx, params["wo"], params["bo"])

    def ln(x, g, b, eps=1e-5):
        m = jnp.mean(x, axis=-1, keepdims=True)
        v = jnp.mean((x - m) ** 2, axis=-1, keepdims=True)
        return (x - m) / jnp.sqrt(v + eps) * g + b

    x = query_tokens + attn_out
    x = ln(x, params["g1"], params["be1"])
    ff = proj(jnp.maximum(proj(x, params["w1"], params["b1"]), 0.0),
              params["w2"], params["b2"])
    x = x + ff
    x = ln(x, params["g2"], params["be2"])
    return x


def make_params(key, d_model, nhead, dim_feedforward):
    ks = jax.random.split(key, 12)
    s_d = 1.0 / math.sqrt(d_model)
    s_f = 1.0 / math.sqrt(dim_feedforward)
    p = {
        "wq": jax.random.normal(ks[0], (d_model, d_model), jnp.float32) * s_d,
        "bq": jax.random.normal(ks[1], (1, d_model), jnp.float32) * 0.01,
        "wk": jax.random.normal(ks[2], (d_model, d_model), jnp.float32) * s_d,
        "bk": jax.random.normal(ks[3], (1, d_model), jnp.float32) * 0.01,
        "wv": jax.random.normal(ks[4], (d_model, d_model), jnp.float32) * s_d,
        "bv": jax.random.normal(ks[5], (1, d_model), jnp.float32) * 0.01,
        "wo": jax.random.normal(ks[6], (d_model, d_model), jnp.float32) * s_d,
        "bo": jax.random.normal(ks[7], (1, d_model), jnp.float32) * 0.01,
        "w1": jax.random.normal(ks[8], (d_model, dim_feedforward), jnp.float32) * s_d,
        "b1": jax.random.normal(ks[9], (1, dim_feedforward), jnp.float32) * 0.01,
        "w2": jax.random.normal(ks[10], (dim_feedforward, d_model), jnp.float32) * s_f,
        "b2": jax.random.normal(ks[11], (1, d_model), jnp.float32) * 0.01,
        "g1": jnp.ones((1, d_model), jnp.float32),
        "be1": jnp.zeros((1, d_model), jnp.float32),
        "g2": jnp.ones((1, d_model), jnp.float32),
        "be2": jnp.zeros((1, d_model), jnp.float32),
    }
    return p


if __name__ == "__main__":
    B, Q, A, D = 2, 8, 16, 32
    NHEAD, DFF = 4, 64

    key = jax.random.PRNGKey(0)
    kq, ka, kp = jax.random.split(key, 3)
    query_tokens = jax.random.normal(kq, (B, Q, D), jnp.float32)
    all_tokens = jax.random.normal(ka, (B, A, D), jnp.float32)
    params = make_params(kp, D, NHEAD, DFF)

    # One-time weight transform (hoisted out of the per-call path).
    prepped = prepare_params(params, nhead=NHEAD)

    out = qtransformer_layer(query_tokens, all_tokens, prepped, nhead=NHEAD)
    out = jax.block_until_ready(out)

    ref = jax.block_until_ready(
        reference_layer(query_tokens, all_tokens, params, nhead=NHEAD))
    # bf16 MXU inputs (projections, attention core, FFN) + approx reciprocal
    # -> loose tolerance vs the f32 reference.
    np.testing.assert_allclose(np.asarray(out), np.asarray(ref),
                               rtol=3e-2, atol=3e-2)

    print("KERNEL_OK")
</pallas_src>

<mosaic_0001>
module attributes {stable_mosaic.version = 11 : i64} {
  func.func @qtransformer_kernel(%arg0: i32, %arg1: memref<2x8x32xf32, #tpu.memory_space<vmem>>, %arg2: memref<2x16x32xf32, #tpu.memory_space<vmem>>, %arg3: memref<32x32xbf16, #tpu.memory_space<vmem>>, %arg4: memref<1x32xf32, #tpu.memory_space<vmem>>, %arg5: memref<32x64xbf16, #tpu.memory_space<vmem>>, %arg6: memref<1x64xf32, #tpu.memory_space<vmem>>, %arg7: memref<32x32xbf16, #tpu.memory_space<vmem>>, %arg8: memref<1x32xf32, #tpu.memory_space<vmem>>, %arg9: memref<32x64xbf16, #tpu.memory_space<vmem>>, %arg10: memref<1x64xf32, #tpu.memory_space<vmem>>, %arg11: memref<64x32xbf16, #tpu.memory_space<vmem>>, %arg12: memref<1x32xf32, #tpu.memory_space<vmem>>, %arg13: memref<1x32xf32, #tpu.memory_space<vmem>>, %arg14: memref<1x32xf32, #tpu.memory_space<vmem>>, %arg15: memref<1x32xf32, #tpu.memory_space<vmem>>, %arg16: memref<1x32xf32, #tpu.memory_space<vmem>>, %arg17: memref<2x8x32xf32, #tpu.memory_space<vmem>>) attributes {dimension_semantics = [#tpu.dimension_semantics<parallel>], iteration_bounds = array<i64: 1>, scalar_prefetch = 0 : i64, scratch_operands = 0 : i64, tpu.core_type = #tpu.core_type<tc>, window_params = [{transform_indices = @transform_0, window_bounds = array<i64: 2, 8, 32>}, {transform_indices = @transform_1, window_bounds = array<i64: 2, 16, 32>}, {pipeline_mode = #tpu.pipeline_mode<synchronous>, transform_indices = @transform_2, window_bounds = array<i64: 32, 32>}, {pipeline_mode = #tpu.pipeline_mode<synchronous>, transform_indices = @transform_3, window_bounds = array<i64: 1, 32>}, {pipeline_mode = #tpu.pipeline_mode<synchronous>, transform_indices = @transform_4, window_bounds = array<i64: 32, 64>}, {pipeline_mode = #tpu.pipeline_mode<synchronous>, transform_indices = @transform_5, window_bounds = array<i64: 1, 64>}, {pipeline_mode = #tpu.pipeline_mode<synchronous>, transform_indices = @transform_6, window_bounds = array<i64: 32, 32>}, {pipeline_mode = #tpu.pipeline_mode<synchronous>, transform_indices = @transform_7, window_bounds = array<i64: 1, 32>}, {pipeline_mode = #tpu.pipeline_mode<synchronous>, transform_indices = @transform_8, window_bounds = array<i64: 32, 64>}, {pipeline_mode = #tpu.pipeline_mode<synchronous>, transform_indices = @transform_9, window_bounds = array<i64: 1, 64>}, {pipeline_mode = #tpu.pipeline_mode<synchronous>, transform_indices = @transform_10, window_bounds = array<i64: 64, 32>}, {pipeline_mode = #tpu.pipeline_mode<synchronous>, transform_indices = @transform_11, window_bounds = array<i64: 1, 32>}, {pipeline_mode = #tpu.pipeline_mode<synchronous>, transform_indices = @transform_12, window_bounds = array<i64: 1, 32>}, {pipeline_mode = #tpu.pipeline_mode<synchronous>, transform_indices = @transform_13, window_bounds = array<i64: 1, 32>}, {pipeline_mode = #tpu.pipeline_mode<synchronous>, transform_indices = @transform_14, window_bounds = array<i64: 1, 32>}, {pipeline_mode = #tpu.pipeline_mode<synchronous>, transform_indices = @transform_15, window_bounds = array<i64: 1, 32>}, {transform_indices = @transform_16, window_bounds = array<i64: 2, 8, 32>}]} {
    %c0 = arith.constant 0 : index
    %c0_0 = arith.constant 0 : index
    %c0_1 = arith.constant 0 : index
    %0 = vector.load %arg1[%c0, %c0_0, %c0_1] : memref<2x8x32xf32, #tpu.memory_space<vmem>>, vector<2x8x32xf32>
    %1 = vector.shape_cast %0 : vector<2x8x32xf32> to vector<16x32xf32>
    %c0_2 = arith.constant 0 : index
    %c0_3 = arith.constant 0 : index
    %c0_4 = arith.constant 0 : index
    %2 = vector.load %arg2[%c0_2, %c0_3, %c0_4] : memref<2x16x32xf32, #tpu.memory_space<vmem>>, vector<2x16x32xf32>
    %3 = vector.shape_cast %2 : vector<2x16x32xf32> to vector<32x32xf32>
    %4 = arith.truncf %1 : vector<16x32xf32> to vector<16x32xbf16>
    %c0_5 = arith.constant 0 : index
    %c0_6 = arith.constant 0 : index
    %5 = vector.load %arg3[%c0_5, %c0_6] : memref<32x32xbf16, #tpu.memory_space<vmem>>, vector<32x32xbf16>
    %cst = arith.constant dense<0.000000e+00> : vector<16x32xf32>
    %6 = tpu.matmul %4, %5, %cst {dimension_numbers = #tpu.dot_dimension_numbers<[1], [0], [0], [1], [0, 0, 1, 1], [], []>} : vector<16x32xbf16>, vector<32x32xbf16>, vector<16x32xf32> -> vector<16x32xf32>
    %c0_7 = arith.constant 0 : index
    %c0_8 = arith.constant 0 : index
    %7 = vector.load %arg4[%c0_7, %c0_8] : memref<1x32xf32, #tpu.memory_space<vmem>>, vector<1x32xf32>
    %8 = vector.broadcast %7 : vector<1x32xf32> to vector<16x32xf32>
    %9 = arith.addf %6, %8 : vector<16x32xf32>
    %10 = arith.truncf %3 : vector<32x32xf32> to vector<32x32xbf16>
    %c0_9 = arith.constant 0 : index
    %c0_10 = arith.constant 0 : index
    %11 = vector.load %arg5[%c0_9, %c0_10] : memref<32x64xbf16, #tpu.memory_space<vmem>>, vector<32x64xbf16>
    %cst_11 = arith.constant dense<0.000000e+00> : vector<32x64xf32>
    %12 = tpu.matmul %10, %11, %cst_11 {dimension_numbers = #tpu.dot_dimension_numbers<[1], [0], [0], [1], [0, 0, 1, 1], [], []>} : vector<32x32xbf16>, vector<32x64xbf16>, vector<32x64xf32> -> vector<32x64xf32>
    %c0_12 = arith.constant 0 : index
    %c0_13 = arith.constant 0 : index
    %13 = vector.load %arg6[%c0_12, %c0_13] : memref<1x64xf32, #tpu.memory_space<vmem>>, vector<1x64xf32>
    %14 = vector.broadcast %13 : vector<1x64xf32> to vector<32x64xf32>
    %15 = arith.addf %12, %14 : vector<32x64xf32>
    %16 = vector.extract_strided_slice %9 {offsets = [0, 0], sizes = [16, 8], strides = [1, 1]} : vector<16x32xf32> to vector<16x8xf32>
    %17 = vector.shape_cast %16 : vector<16x8xf32> to vector<1x16x8xf32>
    %18 = vector.extract_strided_slice %9 {offsets = [0, 8], sizes = [16, 8], strides = [1, 1]} : vector<16x32xf32> to vector<16x8xf32>
    %19 = vector.shape_cast %18 : vector<16x8xf32> to vector<1x16x8xf32>
    %20 = vector.extract_strided_slice %9 {offsets = [0, 16], sizes = [16, 8], strides = [1, 1]} : vector<16x32xf32> to vector<16x8xf32>
    %21 = vector.shape_cast %20 : vector<16x8xf32> to vector<1x16x8xf32>
    %22 = vector.extract_strided_slice %9 {offsets = [0, 24], sizes = [16, 8], strides = [1, 1]} : vector<16x32xf32> to vector<16x8xf32>
    %23 = vector.shape_cast %22 : vector<16x8xf32> to vector<1x16x8xf32>
    %24 = tpu.concatenate %17, %19, %21, %23 in 0 : vector<1x16x8xf32>, vector<1x16x8xf32>, vector<1x16x8xf32>, vector<1x16x8xf32> -> vector<4x16x8xf32>
    %25 = vector.shape_cast %24 : vector<4x16x8xf32> to vector<8x8x8xf32>
    %26 = arith.truncf %25 : vector<8x8x8xf32> to vector<8x8x8xbf16>
    %27 = vector.extract_strided_slice %15 {offsets = [0, 0], sizes = [32, 8], strides = [1, 1]} : vector<32x64xf32> to vector<32x8xf32>
    %28 = vector.shape_cast %27 : vector<32x8xf32> to vector<1x32x8xf32>
    %29 = vector.extract_strided_slice %15 {offsets = [0, 8], sizes = [32, 8], strides = [1, 1]} : vector<32x64xf32> to vector<32x8xf32>
    %30 = vector.shape_cast %29 : vector<32x8xf32> to vector<1x32x8xf32>
    %31 = vector.extract_strided_slice %15 {offsets = [0, 16], sizes = [32, 8], strides = [1, 1]} : vector<32x64xf32> to vector<32x8xf32>
    %32 = vector.shape_cast %31 : vector<32x8xf32> to vector<1x32x8xf32>
    %33 = vector.extract_strided_slice %15 {offsets = [0, 24], sizes = [32, 8], strides = [1, 1]} : vector<32x64xf32> to vector<32x8xf32>
    %34 = vector.shape_cast %33 : vector<32x8xf32> to vector<1x32x8xf32>
    %35 = tpu.concatenate %28, %30, %32, %34 in 0 : vector<1x32x8xf32>, vector<1x32x8xf32>, vector<1x32x8xf32>, vector<1x32x8xf32> -> vector<4x32x8xf32>
    %36 = vector.shape_cast %35 : vector<4x32x8xf32> to vector<8x16x8xf32>
    %37 = arith.truncf %36 : vector<8x16x8xf32> to vector<8x16x8xbf16>
    %38 = vector.extract_strided_slice %15 {offsets = [0, 32], sizes = [32, 8], strides = [1, 1]} : vector<32x64xf32> to vector<32x8xf32>
    %39 = vector.shape_cast %38 : vector<32x8xf32> to vector<1x32x8xf32>
    %40 = vector.extract_strided_slice %15 {offsets = [0, 40], sizes = [32, 8], strides = [1, 1]} : vector<32x64xf32> to vector<32x8xf32>
    %41 = vector.shape_cast %40 : vector<32x8xf32> to vector<1x32x8xf32>
    %42 = vector.extract_strided_slice %15 {offsets = [0, 48], sizes = [32, 8], strides = [1, 1]} : vector<32x64xf32> to vector<32x8xf32>
    %43 = vector.shape_cast %42 : vector<32x8xf32> to vector<1x32x8xf32>
    %44 = vector.extract_strided_slice %15 {offsets = [0, 56], sizes = [32, 8], strides = [1, 1]} : vector<32x64xf32> to vector<32x8xf32>
    %45 = vector.shape_cast %44 : vector<32x8xf32> to vector<1x32x8xf32>
    %46 = tpu.concatenate %39, %41, %43, %45 in 0 : vector<1x32x8xf32>, vector<1x32x8xf32>, vector<1x32x8xf32>, vector<1x32x8xf32> -> vector<4x32x8xf32>
    %47 = vector.shape_cast %46 : vector<4x32x8xf32> to vector<8x16x8xf32>
    %48 = arith.truncf %47 : vector<8x16x8xf32> to vector<8x16x8xbf16>
    "tpu.trace_start"() <{level = 10 : i32, message = "gqd,gkd->gqk"}> : () -> ()
    %cst_14 = arith.constant dense<0.000000e+00> : vector<8x8x16xf32>
    %49 = tpu.matmul %26, %37, %cst_14 {dimension_numbers = #tpu.dot_dimension_numbers<[2], [2], [1], [1], [0, 0, 0, 1, 1, 1], [0], [0]>} : vector<8x8x8xbf16>, vector<8x16x8xbf16>, vector<8x8x16xf32> -> vector<8x8x16xf32>
    "tpu.trace_stop"() : () -> ()
    %cst_15 = arith.constant dense<0xFF800000> : vector<8x8xf32>
    %50 = vector.multi_reduction <maximumf>, %49, %cst_15 [2] : vector<8x8x16xf32> to vector<8x8xf32>
    %51 = vector.shape_cast %50 : vector<8x8xf32> to vector<8x8x1xf32>
    %52 = vector.broadcast %51 : vector<8x8x1xf32> to vector<8x8x16xf32>
    %53 = arith.subf %49, %52 : vector<8x8x16xf32>
    %54 = math.exp %53 : vector<8x8x16xf32>
    %cst_16 = arith.constant dense<0.000000e+00> : vector<8x8xf32>
    %55 = vector.multi_reduction <add>, %54, %cst_16 [2] : vector<8x8x16xf32> to vector<8x8xf32>
    %56 = vector.shape_cast %55 : vector<8x8xf32> to vector<8x8x1xf32>
    %57 = tpu.reciprocal %56 {approx = true} : vector<8x8x1xf32> -> vector<8x8x1xf32>
    %58 = vector.broadcast %57 : vector<8x8x1xf32> to vector<8x8x16xf32>
    %59 = arith.mulf %54, %58 : vector<8x8x16xf32>
    %60 = arith.truncf %59 : vector<8x8x16xf32> to vector<8x8x16xbf16>
    "tpu.trace_start"() <{level = 10 : i32, message = "gqk,gkd->gqd"}> : () -> ()
    %cst_17 = arith.constant dense<0.000000e+00> : vector<8x8x8xf32>
    %61 = tpu.matmul %60, %48, %cst_17 {dimension_numbers = #tpu.dot_dimension_numbers<[2], [1], [1], [2], [0, 0, 0, 1, 1, 2], [0], [0]>} : vector<8x8x16xbf16>, vector<8x16x8xbf16>, vector<8x8x8xf32> -> vector<8x8x8xf32>
    "tpu.trace_stop"() : () -> ()
    %62 = vector.shape_cast %61 : vector<8x8x8xf32> to vector<4x16x8xf32>
    %63 = vector.extract_strided_slice %62 {offsets = [0, 0, 0], sizes = [1, 16, 8], strides = [1, 1, 1]} : vector<4x16x8xf32> to vector<1x16x8xf32>
    %64 = vector.shape_cast %63 : vector<1x16x8xf32> to vector<16x8xf32>
    %65 = vector.extract_strided_slice %62 {offsets = [1, 0, 0], sizes = [1, 16, 8], strides = [1, 1, 1]} : vector<4x16x8xf32> to vector<1x16x8xf32>
    %66 = vector.shape_cast %65 : vector<1x16x8xf32> to vector<16x8xf32>
    %67 = vector.extract_strided_slice %62 {offsets = [2, 0, 0], sizes = [1, 16, 8], strides = [1, 1, 1]} : vector<4x16x8xf32> to vector<1x16x8xf32>
    %68 = vector.shape_cast %67 : vector<1x16x8xf32> to vector<16x8xf32>
    %69 = vector.extract_strided_slice %62 {offsets = [3, 0, 0], sizes = [1, 16, 8], strides = [1, 1, 1]} : vector<4x16x8xf32> to vector<1x16x8xf32>
    %70 = vector.shape_cast %69 : vector<1x16x8xf32> to vector<16x8xf32>
    %71 = tpu.concatenate %64, %66, %68, %70 in 1 : vector<16x8xf32>, vector<16x8xf32>, vector<16x8xf32>, vector<16x8xf32> -> vector<16x32xf32>
    %72 = arith.truncf %71 : vector<16x32xf32> to vector<16x32xbf16>
    %c0_18 = arith.constant 0 : index
    %c0_19 = arith.constant 0 : index
    %73 = vector.load %arg7[%c0_18, %c0_19] : memref<32x32xbf16, #tpu.memory_space<vmem>>, vector<32x32xbf16>
    %cst_20 = arith.constant dense<0.000000e+00> : vector<16x32xf32>
    %74 = tpu.matmul %72, %73, %cst_20 {dimension_numbers = #tpu.dot_dimension_numbers<[1], [0], [0], [1], [0, 0, 1, 1], [], []>} : vector<16x32xbf16>, vector<32x32xbf16>, vector<16x32xf32> -> vector<16x32xf32>
    %c0_21 = arith.constant 0 : index
    %c0_22 = arith.constant 0 : index
    %75 = vector.load %arg8[%c0_21, %c0_22] : memref<1x32xf32, #tpu.memory_space<vmem>>, vector<1x32xf32>
    %76 = vector.broadcast %75 : vector<1x32xf32> to vector<16x32xf32>
    %77 = arith.addf %74, %76 : vector<16x32xf32>
    %78 = arith.addf %1, %77 : vector<16x32xf32>
    %c0_23 = arith.constant 0 : index
    %c0_24 = arith.constant 0 : index
    %79 = vector.load %arg13[%c0_23, %c0_24] : memref<1x32xf32, #tpu.memory_space<vmem>>, vector<1x32xf32>
    %c0_25 = arith.constant 0 : index
    %c0_26 = arith.constant 0 : index
    %80 = vector.load %arg14[%c0_25, %c0_26] : memref<1x32xf32, #tpu.memory_space<vmem>>, vector<1x32xf32>
    %cst_27 = arith.constant dense<0.000000e+00> : vector<16xf32>
    %81 = vector.multi_reduction <add>, %78, %cst_27 [1] : vector<16x32xf32> to vector<16xf32>
    %82 = vector.shape_cast %81 : vector<16xf32> to vector<16x1xf32>
    %cst_28 = arith.constant 3.200000e+01 : f32
    %83 = vector.broadcast %cst_28 : f32 to vector<16x1xf32>
    %84 = arith.divf %82, %83 : vector<16x1xf32>
    %85 = vector.broadcast %84 : vector<16x1xf32> to vector<16x32xf32>
    %86 = arith.subf %78, %85 : vector<16x32xf32>
    %87 = arith.mulf %86, %86 : vector<16x32xf32>
    %cst_29 = arith.constant dense<0.000000e+00> : vector<16xf32>
    %88 = vector.multi_reduction <add>, %87, %cst_29 [1] : vector<16x32xf32> to vector<16xf32>
    %89 = vector.shape_cast %88 : vector<16xf32> to vector<16x1xf32>
    %cst_30 = arith.constant 3.200000e+01 : f32
    %90 = vector.broadcast %cst_30 : f32 to vector<16x1xf32>
    %91 = arith.divf %89, %90 : vector<16x1xf32>
    %92 = vector.broadcast %84 : vector<16x1xf32> to vector<16x32xf32>
    %93 = arith.subf %78, %92 : vector<16x32xf32>
    %cst_31 = arith.constant 9.99999974E-6 : f32
    %94 = vector.broadcast %cst_31 : f32 to vector<16x1xf32>
    %95 = arith.addf %91, %94 : vector<16x1xf32>
    %96 = math.rsqrt %95 : vector<16x1xf32>
    %97 = vector.broadcast %96 : vector<16x1xf32> to vector<16x32xf32>
    %98 = arith.mulf %93, %97 : vector<16x32xf32>
    %99 = vector.broadcast %79 : vector<1x32xf32> to vector<16x32xf32>
    %100 = arith.mulf %98, %99 : vector<16x32xf32>
    %101 = vector.broadcast %80 : vector<1x32xf32> to vector<16x32xf32>
    %102 = arith.addf %100, %101 : vector<16x32xf32>
    %103 = arith.truncf %102 : vector<16x32xf32> to vector<16x32xbf16>
    %c0_32 = arith.constant 0 : index
    %c0_33 = arith.constant 0 : index
    %104 = vector.load %arg9[%c0_32, %c0_33] : memref<32x64xbf16, #tpu.memory_space<vmem>>, vector<32x64xbf16>
    %cst_34 = arith.constant dense<0.000000e+00> : vector<16x64xf32>
    %105 = tpu.matmul %103, %104, %cst_34 {dimension_numbers = #tpu.dot_dimension_numbers<[1], [0], [0], [1], [0, 0, 1, 1], [], []>} : vector<16x32xbf16>, vector<32x64xbf16>, vector<16x64xf32> -> vector<16x64xf32>
    %c0_35 = arith.constant 0 : index
    %c0_36 = arith.constant 0 : index
    %106 = vector.load %arg10[%c0_35, %c0_36] : memref<1x64xf32, #tpu.memory_space<vmem>>, vector<1x64xf32>
    %107 = vector.broadcast %106 : vector<1x64xf32> to vector<16x64xf32>
    %108 = arith.addf %105, %107 : vector<16x64xf32>
    %cst_37 = arith.constant 0.000000e+00 : f32
    %109 = vector.broadcast %cst_37 : f32 to vector<16x64xf32>
    %110 = arith.maximumf %108, %109 : vector<16x64xf32>
    %111 = arith.truncf %110 : vector<16x64xf32> to vector<16x64xbf16>
    %c0_38 = arith.constant 0 : index
    %c0_39 = arith.constant 0 : index
    %112 = vector.load %arg11[%c0_38, %c0_39] : memref<64x32xbf16, #tpu.memory_space<vmem>>, vector<64x32xbf16>
    %cst_40 = arith.constant dense<0.000000e+00> : vector<16x32xf32>
    %113 = tpu.matmul %111, %112, %cst_40 {dimension_numbers = #tpu.dot_dimension_numbers<[1], [0], [0], [1], [0, 0, 1, 1], [], []>} : vector<16x64xbf16>, vector<64x32xbf16>, vector<16x32xf32> -> vector<16x32xf32>
    %c0_41 = arith.constant 0 : index
    %c0_42 = arith.constant 0 : index
    %114 = vector.load %arg12[%c0_41, %c0_42] : memref<1x32xf32, #tpu.memory_space<vmem>>, vector<1x32xf32>
    %115 = vector.broadcast %114 : vector<1x32xf32> to vector<16x32xf32>
    %116 = arith.addf %113, %115 : vector<16x32xf32>
    %117 = arith.addf %102, %116 : vector<16x32xf32>
    %c0_43 = arith.constant 0 : index
    %c0_44 = arith.constant 0 : index
    %118 = vector.load %arg15[%c0_43, %c0_44] : memref<1x32xf32, #tpu.memory_space<vmem>>, vector<1x32xf32>
    %c0_45 = arith.constant 0 : index
    %c0_46 = arith.constant 0 : index
    %119 = vector.load %arg16[%c0_45, %c0_46] : memref<1x32xf32, #tpu.memory_space<vmem>>, vector<1x32xf32>
    %cst_47 = arith.constant dense<0.000000e+00> : vector<16xf32>
    %120 = vector.multi_reduction <add>, %117, %cst_47 [1] : vector<16x32xf32> to vector<16xf32>
    %121 = vector.shape_cast %120 : vector<16xf32> to vector<16x1xf32>
    %cst_48 = arith.constant 3.200000e+01 : f32
    %122 = vector.broadcast %cst_48 : f32 to vector<16x1xf32>
    %123 = arith.divf %121, %122 : vector<16x1xf32>
    %124 = vector.broadcast %123 : vector<16x1xf32> to vector<16x32xf32>
    %125 = arith.subf %117, %124 : vector<16x32xf32>
    %126 = arith.mulf %125, %125 : vector<16x32xf32>
    %cst_49 = arith.constant dense<0.000000e+00> : vector<16xf32>
    %127 = vector.multi_reduction <add>, %126, %cst_49 [1] : vector<16x32xf32> to vector<16xf32>
    %128 = vector.shape_cast %127 : vector<16xf32> to vector<16x1xf32>
    %cst_50 = arith.constant 3.200000e+01 : f32
    %129 = vector.broadcast %cst_50 : f32 to vector<16x1xf32>
    %130 = arith.divf %128, %129 : vector<16x1xf32>
    %131 = vector.broadcast %123 : vector<16x1xf32> to vector<16x32xf32>
    %132 = arith.subf %117, %131 : vector<16x32xf32>
    %cst_51 = arith.constant 9.99999974E-6 : f32
    %133 = vector.broadcast %cst_51 : f32 to vector<16x1xf32>
    %134 = arith.addf %130, %133 : vector<16x1xf32>
    %135 = math.rsqrt %134 : vector<16x1xf32>
    %136 = vector.broadcast %135 : vector<16x1xf32> to vector<16x32xf32>
    %137 = arith.mulf %132, %136 : vector<16x32xf32>
    %138 = vector.broadcast %118 : vector<1x32xf32> to vector<16x32xf32>
    %139 = arith.mulf %137, %138 : vector<16x32xf32>
    %140 = vector.broadcast %119 : vector<1x32xf32> to vector<16x32xf32>
    %141 = arith.addf %139, %140 : vector<16x32xf32>
    %142 = vector.shape_cast %141 : vector<16x32xf32> to vector<2x8x32xf32>
    %c0_52 = arith.constant 0 : index
    %c0_53 = arith.constant 0 : index
    %c0_54 = arith.constant 0 : index
    %143 = vector.load %arg17[%c0_52, %c0_53, %c0_54] : memref<2x8x32xf32, #tpu.memory_space<vmem>>, vector<2x8x32xf32>
    tpu.vector_store %arg17[%c0_52, %c0_53, %c0_54], %142 {strides = array<i32>} : memref<2x8x32xf32, #tpu.memory_space<vmem>>, vector<2x8x32xf32>,
    return
  }
  func.func @transform_0(%arg0: i32) -> (i32, i32, i32) {
    %c0_i32 = arith.constant 0 : i32
    %c0_i32_0 = arith.constant 0 : i32
    %c0_i32_1 = arith.constant 0 : i32
    return %arg0, %c0_i32, %c0_i32_0 : i32, i32, i32
  }
  func.func @transform_1(%arg0: i32) -> (i32, i32, i32) {
    %c0_i32 = arith.constant 0 : i32
    %c0_i32_0 = arith.constant 0 : i32
    %c0_i32_1 = arith.constant 0 : i32
    return %arg0, %c0_i32, %c0_i32_0 : i32, i32, i32
  }
  func.func @transform_2(%arg0: i32) -> (i32, i32) {
    %c0_i32 = arith.constant 0 : i32
    %c0_i32_0 = arith.constant 0 : i32
    %c0_i32_1 = arith.constant 0 : i32
    return %c0_i32, %c0_i32_0 : i32, i32
  }
  func.func @transform_3(%arg0: i32) -> (i32, i32) {
    %c0_i32 = arith.constant 0 : i32
    %c0_i32_0 = arith.constant 0 : i32
    %c0_i32_1 = arith.constant 0 : i32
    return %c0_i32, %c0_i32_0 : i32, i32
  }
  func.func @transform_4(%arg0: i32) -> (i32, i32) {
    %c0_i32 = arith.constant 0 : i32
    %c0_i32_0 = arith.constant 0 : i32
    %c0_i32_1 = arith.constant 0 : i32
    return %c0_i32, %c0_i32_0 : i32, i32
  }
  func.func @transform_5(%arg0: i32) -> (i32, i32) {
    %c0_i32 = arith.constant 0 : i32
    %c0_i32_0 = arith.constant 0 : i32
    %c0_i32_1 = arith.constant 0 : i32
    return %c0_i32, %c0_i32_0 : i32, i32
  }
  func.func @transform_6(%arg0: i32) -> (i32, i32) {
    %c0_i32 = arith.constant 0 : i32
    %c0_i32_0 = arith.constant 0 : i32
    %c0_i32_1 = arith.constant 0 : i32
    return %c0_i32, %c0_i32_0 : i32, i32
  }
  func.func @transform_7(%arg0: i32) -> (i32, i32) {
    %c0_i32 = arith.constant 0 : i32
    %c0_i32_0 = arith.constant 0 : i32
    %c0_i32_1 = arith.constant 0 : i32
    return %c0_i32, %c0_i32_0 : i32, i32
  }
  func.func @transform_8(%arg0: i32) -> (i32, i32) {
    %c0_i32 = arith.constant 0 : i32
    %c0_i32_0 = arith.constant 0 : i32
    %c0_i32_1 = arith.constant 0 : i32
    return %c0_i32, %c0_i32_0 : i32, i32
  }
  func.func @transform_9(%arg0: i32) -> (i32, i32) {
    %c0_i32 = arith.constant 0 : i32
    %c0_i32_0 = arith.constant 0 : i32
    %c0_i32_1 = arith.constant 0 : i32
    return %c0_i32, %c0_i32_0 : i32, i32
  }
  func.func @transform_10(%arg0: i32) -> (i32, i32) {
    %c0_i32 = arith.constant 0 : i32
    %c0_i32_0 = arith.constant 0 : i32
    %c0_i32_1 = arith.constant 0 : i32
    return %c0_i32, %c0_i32_0 : i32, i32
  }
  func.func @transform_11(%arg0: i32) -> (i32, i32) {
    %c0_i32 = arith.constant 0 : i32
    %c0_i32_0 = arith.constant 0 : i32
    %c0_i32_1 = arith.constant 0 : i32
    return %c0_i32, %c0_i32_0 : i32, i32
  }
  func.func @transform_12(%arg0: i32) -> (i32, i32) {
    %c0_i32 = arith.constant 0 : i32
    %c0_i32_0 = arith.constant 0 : i32
    %c0_i32_1 = arith.constant 0 : i32
    return %c0_i32, %c0_i32_0 : i32, i32
  }
  func.func @transform_13(%arg0: i32) -> (i32, i32) {
    %c0_i32 = arith.constant 0 : i32
    %c0_i32_0 = arith.constant 0 : i32
    %c0_i32_1 = arith.constant 0 : i32
    return %c0_i32, %c0_i32_0 : i32, i32
  }
  func.func @transform_14(%arg0: i32) -> (i32, i32) {
    %c0_i32 = arith.constant 0 : i32
    %c0_i32_0 = arith.constant 0 : i32
    %c0_i32_1 = arith.constant 0 : i32
    return %c0_i32, %c0_i32_0 : i32, i32
  }
  func.func @transform_15(%arg0: i32) -> (i32, i32) {
    %c0_i32 = arith.constant 0 : i32
    %c0_i32_0 = arith.constant 0 : i32
    %c0_i32_1 = arith.constant 0 : i32
    return %c0_i32, %c0_i32_0 : i32, i32
  }
  func.func @transform_16(%arg0: i32) -> (i32, i32, i32) {
    %c0_i32 = arith.constant 0 : i32
    %c0_i32_0 = arith.constant 0 : i32
    %c0_i32_1 = arith.constant 0 : i32
    return %arg0, %c0_i32, %c0_i32_0 : i32, i32, i32
  }
}

module attributes {stable_mosaic.version = 11 : i64} {
  func.func @qtransformer_kernel(%arg0: i32, %arg1: memref<2x8x32xf32, #tpu.memory_space<vmem>>, %arg2: memref<2x16x32xf32, #tpu.memory_space<vmem>>, %arg3: memref<32x32xbf16, #tpu.memory_space<vmem>>, %arg4: memref<1x32xf32, #tpu.memory_space<vmem>>, %arg5: memref<32x64xbf16, #tpu.memory_space<vmem>>, %arg6: memref<1x64xf32, #tpu.memory_space<vmem>>, %arg7: memref<32x32xbf16, #tpu.memory_space<vmem>>, %arg8: memref<1x32xf32, #tpu.memory_space<vmem>>, %arg9: memref<32x64xbf16, #tpu.memory_space<vmem>>, %arg10: memref<1x64xf32, #tpu.memory_space<vmem>>, %arg11: memref<64x32xbf16, #tpu.memory_space<vmem>>, %arg12: memref<1x32xf32, #tpu.memory_space<vmem>>, %arg13: memref<1x32xf32, #tpu.memory_space<vmem>>, %arg14: memref<1x32xf32, #tpu.memory_space<vmem>>, %arg15: memref<1x32xf32, #tpu.memory_space<vmem>>, %arg16: memref<1x32xf32, #tpu.memory_space<vmem>>, %arg17: memref<2x8x32xf32, #tpu.memory_space<vmem>>) attributes {dimension_semantics = [#tpu.dimension_semantics<parallel>], iteration_bounds = array<i64: 1>, scalar_prefetch = 0 : i64, scratch_operands = 0 : i64, tpu.core_type = #tpu.core_type<tc>, window_params = [{transform_indices = @transform_0, window_bounds = array<i64: 2, 8, 32>}, {transform_indices = @transform_1, window_bounds = array<i64: 2, 16, 32>}, {pipeline_mode = #tpu.pipeline_mode<synchronous>, transform_indices = @transform_2, window_bounds = array<i64: 32, 32>}, {pipeline_mode = #tpu.pipeline_mode<synchronous>, transform_indices = @transform_3, window_bounds = array<i64: 1, 32>}, {pipeline_mode = #tpu.pipeline_mode<synchronous>, transform_indices = @transform_4, window_bounds = array<i64: 32, 64>}, {pipeline_mode = #tpu.pipeline_mode<synchronous>, transform_indices = @transform_5, window_bounds = array<i64: 1, 64>}, {pipeline_mode = #tpu.pipeline_mode<synchronous>, transform_indices = @transform_6, window_bounds = array<i64: 32, 32>}, {pipeline_mode = #tpu.pipeline_mode<synchronous>, transform_indices = @transform_7, window_bounds = array<i64: 1, 32>}, {pipeline_mode = #tpu.pipeline_mode<synchronous>, transform_indices = @transform_8, window_bounds = array<i64: 32, 64>}, {pipeline_mode = #tpu.pipeline_mode<synchronous>, transform_indices = @transform_9, window_bounds = array<i64: 1, 64>}, {pipeline_mode = #tpu.pipeline_mode<synchronous>, transform_indices = @transform_10, window_bounds = array<i64: 64, 32>}, {pipeline_mode = #tpu.pipeline_mode<synchronous>, transform_indices = @transform_11, window_bounds = array<i64: 1, 32>}, {pipeline_mode = #tpu.pipeline_mode<synchronous>, transform_indices = @transform_12, window_bounds = array<i64: 1, 32>}, {pipeline_mode = #tpu.pipeline_mode<synchronous>, transform_indices = @transform_13, window_bounds = array<i64: 1, 32>}, {pipeline_mode = #tpu.pipeline_mode<synchronous>, transform_indices = @transform_14, window_bounds = array<i64: 1, 32>}, {pipeline_mode = #tpu.pipeline_mode<synchronous>, transform_indices = @transform_15, window_bounds = array<i64: 1, 32>}, {transform_indices = @transform_16, window_bounds = array<i64: 2, 8, 32>}]} {
    %c0 = arith.constant 0 : index
    %c0_0 = arith.constant 0 : index
    %c0_1 = arith.constant 0 : index
    %0 = vector.load %arg1[%c0, %c0_0, %c0_1] : memref<2x8x32xf32, #tpu.memory_space<vmem>>, vector<2x8x32xf32>
    %1 = vector.shape_cast %0 : vector<2x8x32xf32> to vector<16x32xf32>
    %c0_2 = arith.constant 0 : index
    %c0_3 = arith.constant 0 : index
    %c0_4 = arith.constant 0 : index
    %2 = vector.load %arg2[%c0_2, %c0_3, %c0_4] : memref<2x16x32xf32, #tpu.memory_space<vmem>>, vector<2x16x32xf32>
    %3 = vector.shape_cast %2 : vector<2x16x32xf32> to vector<32x32xf32>
    %4 = arith.truncf %1 : vector<16x32xf32> to vector<16x32xbf16>
    %c0_5 = arith.constant 0 : index
    %c0_6 = arith.constant 0 : index
    %5 = vector.load %arg3[%c0_5, %c0_6] : memref<32x32xbf16, #tpu.memory_space<vmem>>, vector<32x32xbf16>
    %cst = arith.constant dense<0.000000e+00> : vector<16x32xf32>
    %6 = tpu.matmul %4, %5, %cst {dimension_numbers = #tpu.dot_dimension_numbers<[1], [0], [0], [1], [0, 0, 1, 1], [], []>} : vector<16x32xbf16>, vector<32x32xbf16>, vector<16x32xf32> -> vector<16x32xf32>
    %c0_7 = arith.constant 0 : index
    %c0_8 = arith.constant 0 : index
    %7 = vector.load %arg4[%c0_7, %c0_8] : memref<1x32xf32, #tpu.memory_space<vmem>>, vector<1x32xf32>
    %8 = vector.broadcast %7 : vector<1x32xf32> to vector<16x32xf32>
    %9 = arith.addf %6, %8 : vector<16x32xf32>
    %10 = arith.truncf %3 : vector<32x32xf32> to vector<32x32xbf16>
    %c0_9 = arith.constant 0 : index
    %c0_10 = arith.constant 0 : index
    %11 = vector.load %arg5[%c0_9, %c0_10] : memref<32x64xbf16, #tpu.memory_space<vmem>>, vector<32x64xbf16>
    %cst_11 = arith.constant dense<0.000000e+00> : vector<32x64xf32>
    %12 = tpu.matmul %10, %11, %cst_11 {dimension_numbers = #tpu.dot_dimension_numbers<[1], [0], [0], [1], [0, 0, 1, 1], [], []>} : vector<32x32xbf16>, vector<32x64xbf16>, vector<32x64xf32> -> vector<32x64xf32>
    %c0_12 = arith.constant 0 : index
    %c0_13 = arith.constant 0 : index
    %13 = vector.load %arg6[%c0_12, %c0_13] : memref<1x64xf32, #tpu.memory_space<vmem>>, vector<1x64xf32>
    %14 = vector.broadcast %13 : vector<1x64xf32> to vector<32x64xf32>
    %15 = arith.addf %12, %14 : vector<32x64xf32>
    %16 = vector.extract_strided_slice %9 {offsets = [0, 0], sizes = [16, 8], strides = [1, 1]} : vector<16x32xf32> to vector<16x8xf32>
    %17 = vector.shape_cast %16 : vector<16x8xf32> to vector<1x16x8xf32>
    %18 = vector.extract_strided_slice %9 {offsets = [0, 8], sizes = [16, 8], strides = [1, 1]} : vector<16x32xf32> to vector<16x8xf32>
    %19 = vector.shape_cast %18 : vector<16x8xf32> to vector<1x16x8xf32>
    %20 = vector.extract_strided_slice %9 {offsets = [0, 16], sizes = [16, 8], strides = [1, 1]} : vector<16x32xf32> to vector<16x8xf32>
    %21 = vector.shape_cast %20 : vector<16x8xf32> to vector<1x16x8xf32>
    %22 = vector.extract_strided_slice %9 {offsets = [0, 24], sizes = [16, 8], strides = [1, 1]} : vector<16x32xf32> to vector<16x8xf32>
    %23 = vector.shape_cast %22 : vector<16x8xf32> to vector<1x16x8xf32>
    %24 = tpu.concatenate %17, %19, %21, %23 in 0 : vector<1x16x8xf32>, vector<1x16x8xf32>, vector<1x16x8xf32>, vector<1x16x8xf32> -> vector<4x16x8xf32>
    %25 = vector.shape_cast %24 : vector<4x16x8xf32> to vector<8x8x8xf32>
    %26 = arith.truncf %25 : vector<8x8x8xf32> to vector<8x8x8xbf16>
    %27 = vector.extract_strided_slice %15 {offsets = [0, 0], sizes = [32, 8], strides = [1, 1]} : vector<32x64xf32> to vector<32x8xf32>
    %28 = vector.shape_cast %27 : vector<32x8xf32> to vector<1x32x8xf32>
    %29 = vector.extract_strided_slice %15 {offsets = [0, 8], sizes = [32, 8], strides = [1, 1]} : vector<32x64xf32> to vector<32x8xf32>
    %30 = vector.shape_cast %29 : vector<32x8xf32> to vector<1x32x8xf32>
    %31 = vector.extract_strided_slice %15 {offsets = [0, 16], sizes = [32, 8], strides = [1, 1]} : vector<32x64xf32> to vector<32x8xf32>
    %32 = vector.shape_cast %31 : vector<32x8xf32> to vector<1x32x8xf32>
    %33 = vector.extract_strided_slice %15 {offsets = [0, 24], sizes = [32, 8], strides = [1, 1]} : vector<32x64xf32> to vector<32x8xf32>
    %34 = vector.shape_cast %33 : vector<32x8xf32> to vector<1x32x8xf32>
    %35 = tpu.concatenate %28, %30, %32, %34 in 0 : vector<1x32x8xf32>, vector<1x32x8xf32>, vector<1x32x8xf32>, vector<1x32x8xf32> -> vector<4x32x8xf32>
    %36 = vector.shape_cast %35 : vector<4x32x8xf32> to vector<8x16x8xf32>
    %37 = arith.truncf %36 : vector<8x16x8xf32> to vector<8x16x8xbf16>
    %38 = vector.extract_strided_slice %15 {offsets = [0, 32], sizes = [32, 8], strides = [1, 1]} : vector<32x64xf32> to vector<32x8xf32>
    %39 = vector.shape_cast %38 : vector<32x8xf32> to vector<1x32x8xf32>
    %40 = vector.extract_strided_slice %15 {offsets = [0, 40], sizes = [32, 8], strides = [1, 1]} : vector<32x64xf32> to vector<32x8xf32>
    %41 = vector.shape_cast %40 : vector<32x8xf32> to vector<1x32x8xf32>
    %42 = vector.extract_strided_slice %15 {offsets = [0, 48], sizes = [32, 8], strides = [1, 1]} : vector<32x64xf32> to vector<32x8xf32>
    %43 = vector.shape_cast %42 : vector<32x8xf32> to vector<1x32x8xf32>
    %44 = vector.extract_strided_slice %15 {offsets = [0, 56], sizes = [32, 8], strides = [1, 1]} : vector<32x64xf32> to vector<32x8xf32>
    %45 = vector.shape_cast %44 : vector<32x8xf32> to vector<1x32x8xf32>
    %46 = tpu.concatenate %39, %41, %43, %45 in 0 : vector<1x32x8xf32>, vector<1x32x8xf32>, vector<1x32x8xf32>, vector<1x32x8xf32> -> vector<4x32x8xf32>
    %47 = vector.shape_cast %46 : vector<4x32x8xf32> to vector<8x16x8xf32>
    %48 = arith.truncf %47 : vector<8x16x8xf32> to vector<8x16x8xbf16>
    "tpu.trace_start"() <{level = 10 : i32, message = "gqd,gkd->gqk"}> : () -> ()
    %cst_14 = arith.constant dense<0.000000e+00> : vector<8x8x16xf32>
    %49 = tpu.matmul %26, %37, %cst_14 {dimension_numbers = #tpu.dot_dimension_numbers<[2], [2], [1], [1], [0, 0, 0, 1, 1, 1], [0], [0]>} : vector<8x8x8xbf16>, vector<8x16x8xbf16>, vector<8x8x16xf32> -> vector<8x8x16xf32>
    "tpu.trace_stop"() : () -> ()
    %cst_15 = arith.constant dense<0xFF800000> : vector<8x8xf32>
    %50 = vector.multi_reduction <maximumf>, %49, %cst_15 [2] : vector<8x8x16xf32> to vector<8x8xf32>
    %51 = vector.shape_cast %50 : vector<8x8xf32> to vector<8x8x1xf32>
    %52 = vector.broadcast %51 : vector<8x8x1xf32> to vector<8x8x16xf32>
    %53 = arith.subf %49, %52 : vector<8x8x16xf32>
    %54 = math.exp %53 : vector<8x8x16xf32>
    %cst_16 = arith.constant dense<0.000000e+00> : vector<8x8xf32>
    %55 = vector.multi_reduction <add>, %54, %cst_16 [2] : vector<8x8x16xf32> to vector<8x8xf32>
    %56 = vector.shape_cast %55 : vector<8x8xf32> to vector<8x8x1xf32>
    %57 = tpu.reciprocal %56 {approx = true} : vector<8x8x1xf32> -> vector<8x8x1xf32>
    %58 = vector.broadcast %57 : vector<8x8x1xf32> to vector<8x8x16xf32>
    %59 = arith.mulf %54, %58 : vector<8x8x16xf32>
    %60 = arith.truncf %59 : vector<8x8x16xf32> to vector<8x8x16xbf16>
    "tpu.trace_start"() <{level = 10 : i32, message = "gqk,gkd->gqd"}> : () -> ()
    %cst_17 = arith.constant dense<0.000000e+00> : vector<8x8x8xf32>
    %61 = tpu.matmul %60, %48, %cst_17 {dimension_numbers = #tpu.dot_dimension_numbers<[2], [1], [1], [2], [0, 0, 0, 1, 1, 2], [0], [0]>} : vector<8x8x16xbf16>, vector<8x16x8xbf16>, vector<8x8x8xf32> -> vector<8x8x8xf32>
    "tpu.trace_stop"() : () -> ()
    %62 = vector.shape_cast %61 : vector<8x8x8xf32> to vector<4x16x8xf32>
    %63 = vector.extract_strided_slice %62 {offsets = [0, 0, 0], sizes = [1, 16, 8], strides = [1, 1, 1]} : vector<4x16x8xf32> to vector<1x16x8xf32>
    %64 = vector.shape_cast %63 : vector<1x16x8xf32> to vector<16x8xf32>
    %65 = vector.extract_strided_slice %62 {offsets = [1, 0, 0], sizes = [1, 16, 8], strides = [1, 1, 1]} : vector<4x16x8xf32> to vector<1x16x8xf32>
    %66 = vector.shape_cast %65 : vector<1x16x8xf32> to vector<16x8xf32>
    %67 = vector.extract_strided_slice %62 {offsets = [2, 0, 0], sizes = [1, 16, 8], strides = [1, 1, 1]} : vector<4x16x8xf32> to vector<1x16x8xf32>
    %68 = vector.shape_cast %67 : vector<1x16x8xf32> to vector<16x8xf32>
    %69 = vector.extract_strided_slice %62 {offsets = [3, 0, 0], sizes = [1, 16, 8], strides = [1, 1, 1]} : vector<4x16x8xf32> to vector<1x16x8xf32>
    %70 = vector.shape_cast %69 : vector<1x16x8xf32> to vector<16x8xf32>
    %71 = tpu.concatenate %64, %66, %68, %70 in 1 : vector<16x8xf32>, vector<16x8xf32>, vector<16x8xf32>, vector<16x8xf32> -> vector<16x32xf32>
    %72 = arith.truncf %71 : vector<16x32xf32> to vector<16x32xbf16>
    %c0_18 = arith.constant 0 : index
    %c0_19 = arith.constant 0 : index
    %73 = vector.load %arg7[%c0_18, %c0_19] : memref<32x32xbf16, #tpu.memory_space<vmem>>, vector<32x32xbf16>
    %cst_20 = arith.constant dense<0.000000e+00> : vector<16x32xf32>
    %74 = tpu.matmul %72, %73, %cst_20 {dimension_numbers = #tpu.dot_dimension_numbers<[1], [0], [0], [1], [0, 0, 1, 1], [], []>} : vector<16x32xbf16>, vector<32x32xbf16>, vector<16x32xf32> -> vector<16x32xf32>
    %c0_21 = arith.constant 0 : index
    %c0_22 = arith.constant 0 : index
    %75 = vector.load %arg8[%c0_21, %c0_22] : memref<1x32xf32, #tpu.memory_space<vmem>>, vector<1x32xf32>
    %76 = vector.broadcast %75 : vector<1x32xf32> to vector<16x32xf32>
    %77 = arith.addf %74, %76 : vector<16x32xf32>
    %78 = arith.addf %1, %77 : vector<16x32xf32>
    %c0_23 = arith.constant 0 : index
    %c0_24 = arith.constant 0 : index
    %79 = vector.load %arg13[%c0_23, %c0_24] : memref<1x32xf32, #tpu.memory_space<vmem>>, vector<1x32xf32>
    %c0_25 = arith.constant 0 : index
    %c0_26 = arith.constant 0 : index
    %80 = vector.load %arg14[%c0_25, %c0_26] : memref<1x32xf32, #tpu.memory_space<vmem>>, vector<1x32xf32>
    %cst_27 = arith.constant dense<0.000000e+00> : vector<16xf32>
    %81 = vector.multi_reduction <add>, %78, %cst_27 [1] : vector<16x32xf32> to vector<16xf32>
    %82 = vector.shape_cast %81 : vector<16xf32> to vector<16x1xf32>
    %cst_28 = arith.constant 3.200000e+01 : f32
    %83 = vector.broadcast %cst_28 : f32 to vector<16x1xf32>
    %84 = arith.divf %82, %83 : vector<16x1xf32>
    %85 = vector.broadcast %84 : vector<16x1xf32> to vector<16x32xf32>
    %86 = arith.subf %78, %85 : vector<16x32xf32>
    %87 = arith.mulf %86, %86 : vector<16x32xf32>
    %cst_29 = arith.constant dense<0.000000e+00> : vector<16xf32>
    %88 = vector.multi_reduction <add>, %87, %cst_29 [1] : vector<16x32xf32> to vector<16xf32>
    %89 = vector.shape_cast %88 : vector<16xf32> to vector<16x1xf32>
    %cst_30 = arith.constant 3.200000e+01 : f32
    %90 = vector.broadcast %cst_30 : f32 to vector<16x1xf32>
    %91 = arith.divf %89, %90 : vector<16x1xf32>
    %92 = vector.broadcast %84 : vector<16x1xf32> to vector<16x32xf32>
    %93 = arith.subf %78, %92 : vector<16x32xf32>
    %cst_31 = arith.constant 9.99999974E-6 : f32
    %94 = vector.broadcast %cst_31 : f32 to vector<16x1xf32>
    %95 = arith.addf %91, %94 : vector<16x1xf32>
    %96 = math.rsqrt %95 : vector<16x1xf32>
    %97 = vector.broadcast %96 : vector<16x1xf32> to vector<16x32xf32>
    %98 = arith.mulf %93, %97 : vector<16x32xf32>
    %99 = vector.broadcast %79 : vector<1x32xf32> to vector<16x32xf32>
    %100 = arith.mulf %98, %99 : vector<16x32xf32>
    %101 = vector.broadcast %80 : vector<1x32xf32> to vector<16x32xf32>
    %102 = arith.addf %100, %101 : vector<16x32xf32>
    %103 = arith.truncf %102 : vector<16x32xf32> to vector<16x32xbf16>
    %c0_32 = arith.constant 0 : index
    %c0_33 = arith.constant 0 : index
    %104 = vector.load %arg9[%c0_32, %c0_33] : memref<32x64xbf16, #tpu.memory_space<vmem>>, vector<32x64xbf16>
    %cst_34 = arith.constant dense<0.000000e+00> : vector<16x64xf32>
    %105 = tpu.matmul %103, %104, %cst_34 {dimension_numbers = #tpu.dot_dimension_numbers<[1], [0], [0], [1], [0, 0, 1, 1], [], []>} : vector<16x32xbf16>, vector<32x64xbf16>, vector<16x64xf32> -> vector<16x64xf32>
    %c0_35 = arith.constant 0 : index
    %c0_36 = arith.constant 0 : index
    %106 = vector.load %arg10[%c0_35, %c0_36] : memref<1x64xf32, #tpu.memory_space<vmem>>, vector<1x64xf32>
    %107 = vector.broadcast %106 : vector<1x64xf32> to vector<16x64xf32>
    %108 = arith.addf %105, %107 : vector<16x64xf32>
    %cst_37 = arith.constant 0.000000e+00 : f32
    %109 = vector.broadcast %cst_37 : f32 to vector<16x64xf32>
    %110 = arith.maximumf %108, %109 : vector<16x64xf32>
    %111 = arith.truncf %110 : vector<16x64xf32> to vector<16x64xbf16>
    %c0_38 = arith.constant 0 : index
    %c0_39 = arith.constant 0 : index
    %112 = vector.load %arg11[%c0_38, %c0_39] : memref<64x32xbf16, #tpu.memory_space<vmem>>, vector<64x32xbf16>
    %cst_40 = arith.constant dense<0.000000e+00> : vector<16x32xf32>
    %113 = tpu.matmul %111, %112, %cst_40 {dimension_numbers = #tpu.dot_dimension_numbers<[1], [0], [0], [1], [0, 0, 1, 1], [], []>} : vector<16x64xbf16>, vector<64x32xbf16>, vector<16x32xf32> -> vector<16x32xf32>
    %c0_41 = arith.constant 0 : index
    %c0_42 = arith.constant 0 : index
    %114 = vector.load %arg12[%c0_41, %c0_42] : memref<1x32xf32, #tpu.memory_space<vmem>>, vector<1x32xf32>
    %115 = vector.broadcast %114 : vector<1x32xf32> to vector<16x32xf32>
    %116 = arith.addf %113, %115 : vector<16x32xf32>
    %117 = arith.addf %102, %116 : vector<16x32xf32>
    %c0_43 = arith.constant 0 : index
    %c0_44 = arith.constant 0 : index
    %118 = vector.load %arg15[%c0_43, %c0_44] : memref<1x32xf32, #tpu.memory_space<vmem>>, vector<1x32xf32>
    %c0_45 = arith.constant 0 : index
    %c0_46 = arith.constant 0 : index
    %119 = vector.load %arg16[%c0_45, %c0_46] : memref<1x32xf32, #tpu.memory_space<vmem>>, vector<1x32xf32>
    %cst_47 = arith.constant dense<0.000000e+00> : vector<16xf32>
    %120 = vector.multi_reduction <add>, %117, %cst_47 [1] : vector<16x32xf32> to vector<16xf32>
    %121 = vector.shape_cast %120 : vector<16xf32> to vector<16x1xf32>
    %cst_48 = arith.constant 3.200000e+01 : f32
    %122 = vector.broadcast %cst_48 : f32 to vector<16x1xf32>
    %123 = arith.divf %121, %122 : vector<16x1xf32>
    %124 = vector.broadcast %123 : vector<16x1xf32> to vector<16x32xf32>
    %125 = arith.subf %117, %124 : vector<16x32xf32>
    %126 = arith.mulf %125, %125 : vector<16x32xf32>
    %cst_49 = arith.constant dense<0.000000e+00> : vector<16xf32>
    %127 = vector.multi_reduction <add>, %126, %cst_49 [1] : vector<16x32xf32> to vector<16xf32>
    %128 = vector.shape_cast %127 : vector<16xf32> to vector<16x1xf32>
    %cst_50 = arith.constant 3.200000e+01 : f32
    %129 = vector.broadcast %cst_50 : f32 to vector<16x1xf32>
    %130 = arith.divf %128, %129 : vector<16x1xf32>
    %131 = vector.broadcast %123 : vector<16x1xf32> to vector<16x32xf32>
    %132 = arith.subf %117, %131 : vector<16x32xf32>
    %cst_51 = arith.constant 9.99999974E-6 : f32
    %133 = vector.broadcast %cst_51 : f32 to vector<16x1xf32>
    %134 = arith.addf %130, %133 : vector<16x1xf32>
    %135 = math.rsqrt %134 : vector<16x1xf32>
    %136 = vector.broadcast %135 : vector<16x1xf32> to vector<16x32xf32>
    %137 = arith.mulf %132, %136 : vector<16x32xf32>
    %138 = vector.broadcast %118 : vector<1x32xf32> to vector<16x32xf32>
    %139 = arith.mulf %137, %138 : vector<16x32xf32>
    %140 = vector.broadcast %119 : vector<1x32xf32> to vector<16x32xf32>
    %141 = arith.addf %139, %140 : vector<16x32xf32>
    %142 = vector.shape_cast %141 : vector<16x32xf32> to vector<2x8x32xf32>
    %c0_52 = arith.constant 0 : index
    %c0_53 = arith.constant 0 : index
    %c0_54 = arith.constant 0 : index
    %143 = vector.load %arg17[%c0_52, %c0_53, %c0_54] : memref<2x8x32xf32, #tpu.memory_space<vmem>>, vector<2x8x32xf32>
    tpu.vector_store %arg17[%c0_52, %c0_53, %c0_54], %142 {strides = array<i32>} : memref<2x8x32xf32, #tpu.memory_space<vmem>>, vector<2x8x32xf32>,
    return
  }
  func.func @transform_0(%arg0: i32) -> (i32, i32, i32) {
    %c0_i32 = arith.constant 0 : i32
    %c0_i32_0 = arith.constant 0 : i32
    %c0_i32_1 = arith.constant 0 : i32
    return %arg0, %c0_i32, %c0_i32_0 : i32, i32, i32
  }
  func.func @transform_1(%arg0: i32) -> (i32, i32, i32) {
    %c0_i32 = arith.constant 0 : i32
    %c0_i32_0 = arith.constant 0 : i32
    %c0_i32_1 = arith.constant 0 : i32
    return %arg0, %c0_i32, %c0_i32_0 : i32, i32, i32
  }
  func.func @transform_2(%arg0: i32) -> (i32, i32) {
    %c0_i32 = arith.constant 0 : i32
    %c0_i32_0 = arith.constant 0 : i32
    %c0_i32_1 = arith.constant 0 : i32
    return %c0_i32, %c0_i32_0 : i32, i32
  }
  func.func @transform_3(%arg0: i32) -> (i32, i32) {
    %c0_i32 = arith.constant 0 : i32
    %c0_i32_0 = arith.constant 0 : i32
    %c0_i32_1 = arith.constant 0 : i32
    return %c0_i32, %c0_i32_0 : i32, i32
  }
  func.func @transform_4(%arg0: i32) -> (i32, i32) {
    %c0_i32 = arith.constant 0 : i32
    %c0_i32_0 = arith.constant 0 : i32
    %c0_i32_1 = arith.constant 0 : i32
    return %c0_i32, %c0_i32_0 : i32, i32
  }
  func.func @transform_5(%arg0: i32) -> (i32, i32) {
    %c0_i32 = arith.constant 0 : i32
    %c0_i32_0 = arith.constant 0 : i32
    %c0_i32_1 = arith.constant 0 : i32
    return %c0_i32, %c0_i32_0 : i32, i32
  }
  func.func @transform_6(%arg0: i32) -> (i32, i32) {
    %c0_i32 = arith.constant 0 : i32
    %c0_i32_0 = arith.constant 0 : i32
    %c0_i32_1 = arith.constant 0 : i32
    return %c0_i32, %c0_i32_0 : i32, i32
  }
  func.func @transform_7(%arg0: i32) -> (i32, i32) {
    %c0_i32 = arith.constant 0 : i32
    %c0_i32_0 = arith.constant 0 : i32
    %c0_i32_1 = arith.constant 0 : i32
    return %c0_i32, %c0_i32_0 : i32, i32
  }
  func.func @transform_8(%arg0: i32) -> (i32, i32) {
    %c0_i32 = arith.constant 0 : i32
    %c0_i32_0 = arith.constant 0 : i32
    %c0_i32_1 = arith.constant 0 : i32
    return %c0_i32, %c0_i32_0 : i32, i32
  }
  func.func @transform_9(%arg0: i32) -> (i32, i32) {
    %c0_i32 = arith.constant 0 : i32
    %c0_i32_0 = arith.constant 0 : i32
    %c0_i32_1 = arith.constant 0 : i32
    return %c0_i32, %c0_i32_0 : i32, i32
  }
  func.func @transform_10(%arg0: i32) -> (i32, i32) {
    %c0_i32 = arith.constant 0 : i32
    %c0_i32_0 = arith.constant 0 : i32
    %c0_i32_1 = arith.constant 0 : i32
    return %c0_i32, %c0_i32_0 : i32, i32
  }
  func.func @transform_11(%arg0: i32) -> (i32, i32) {
    %c0_i32 = arith.constant 0 : i32
    %c0_i32_0 = arith.constant 0 : i32
    %c0_i32_1 = arith.constant 0 : i32
    return %c0_i32, %c0_i32_0 : i32, i32
  }
  func.func @transform_12(%arg0: i32) -> (i32, i32) {
    %c0_i32 = arith.constant 0 : i32
    %c0_i32_0 = arith.constant 0 : i32
    %c0_i32_1 = arith.constant 0 : i32
    return %c0_i32, %c0_i32_0 : i32, i32
  }
  func.func @transform_13(%arg0: i32) -> (i32, i32) {
    %c0_i32 = arith.constant 0 : i32
    %c0_i32_0 = arith.constant 0 : i32
    %c0_i32_1 = arith.constant 0 : i32
    return %c0_i32, %c0_i32_0 : i32, i32
  }
  func.func @transform_14(%arg0: i32) -> (i32, i32) {
    %c0_i32 = arith.constant 0 : i32
    %c0_i32_0 = arith.constant 0 : i32
    %c0_i32_1 = arith.constant 0 : i32
    return %c0_i32, %c0_i32_0 : i32, i32
  }
  func.func @transform_15(%arg0: i32) -> (i32, i32) {
    %c0_i32 = arith.constant 0 : i32
    %c0_i32_0 = arith.constant 0 : i32
    %c0_i32_1 = arith.constant 0 : i32
    return %c0_i32, %c0_i32_0 : i32, i32
  }
  func.func @transform_16(%arg0: i32) -> (i32, i32, i32) {
    %c0_i32 = arith.constant 0 : i32
    %c0_i32_0 = arith.constant 0 : i32
    %c0_i32_1 = arith.constant 0 : i32
    return %arg0, %c0_i32, %c0_i32_0 : i32, i32, i32
  }
}

</mosaic_0001>

<bundles_post_ra>
// kernel: tpu_custom_call.1
= control target key start
LH: loop header
LB: loop body
LE: loop exit
PB: predicated region body
PF: predicated region fallthrough
CT: control target
= control target key end

     0   :  { %s2467_s0 = inlined_call_operand.vmem [shape: f32[2,8,32], index: 0, kind: input, shape index: {}]   ;;  %s2468_s1 = inlined_call_operand.vmem [shape: f32[2,16,32], index: 1, kind: input, shape index: {}]   ;;  %s2469_s2 = inlined_call_operand.hbm [shape: bf16[32,32], index: 2, kind: input, shape index: {}]   ;;  %s2470_s3 = inlined_call_operand.vmem [shape: f32[1,32], index: 3, kind: input, shape index: {}]   ;;  %s2471_s4 = inlined_call_operand.hbm [shape: bf16[32,64], index: 4, kind: input, shape index: {}]   ;;  %s2472_s5 = inlined_call_operand.vmem [shape: f32[1,64], index: 5, kind: input, shape index: {}]   ;;  %s2473_s6 = inlined_call_operand.hbm [shape: bf16[32,32], index: 6, kind: input, shape index: {}]   ;;  %s2474_s7 = inlined_call_operand.vmem [shape: f32[1,32], index: 7, kind: input, shape index: {}]   ;;  %s2475_s8 = inlined_call_operand.hbm [shape: bf16[32,64], index: 8, kind: input, shape index: {}]   ;;  %s2476_s9 = inlined_call_operand.vmem [shape: f32[1,64], index: 9, kind: input, shape index: {}]   ;;  %s2477_s10 = inlined_call_operand.vmem [shape: bf16[64,32], index: 10, kind: input, shape index: {}]   ;;  %s2478_s11 = inlined_call_operand.vmem [shape: f32[1,32], index: 11, kind: input, shape index: {}]   ;;  %s2479_s12 = inlined_call_operand.vmem [shape: f32[1,32], index: 12, kind: input, shape index: {}]   ;;  %s2480_s13 = inlined_call_operand.vmem [shape: f32[1,32], index: 13, kind: input, shape index: {}]   ;;  %s2481_s14 = inlined_call_operand.vmem [shape: f32[1,32], index: 14, kind: input, shape index: {}]   ;;  %s2482_s15 = inlined_call_operand.vmem [shape: f32[1,32], index: 15, kind: input, shape index: {}]   ;;  %s2483_s16 = inlined_call_operand.hbm [shape: f32[2,8,32], index: 16, kind: output, shape index: {}]  }
   0x1   :  { %2485 = sst [smem:[#allocation15_spill]] %s2467_s0 }
   0x2   :  { %21 = vsyncpa [#allocation3], 0 }
   0x3   :  { %22 = vsyncpa [#allocation6], 0 }
   0x4   :  { %23 = vsyncpa [#allocation9], 0 }
   0x5   :  { %24 = vsyncpa [#allocation4], 0  ;;  %s2031_s21 = smov [#allocation5]   ;;  %s2032_s23 = smov [#allocation2]  }
   0x6   :  { %s48_s22 = sshll.u32 %s2031_s21, 4  ;;  %s34_s24 = sshll.u32 %s2032_s23, 4  ;;  %s49_s22 = int_to_ptr.vmem [resolvable:$true] %s48_s22  ;;  %s2133_s24 = int_to_ptr.vmem [resolvable:$true] %s34_s24 }
   0x7   :  { %s1913_s27 = scalar_lea.hbm %s2471_s4, 256 }
   0x8   :  { %p1914_p0 = scmp.ne.s32.totalorder %s2471_s4, %s1913_s27  ;;  %p1917_p1 = scmp.lt.u32.totalorder %s1913_s27, %s2471_s4 }
   0xa   :  { %p1919_p2 = pnand %p1917_p1, %p1914_p0 }
   0xc   :  { %1922 = shalt.err (!%p1919_p2)
}
   0xd   :  { %s1923_s17 = scalar_lea.vmem %s49_s22, 256  ;;  %p1928_p4 = scmp.lt.s32.totalorder %s49_s22, %s49_s22 }
   0xe   :  { %p1924_p3 = scmp.ne.s32.totalorder %s49_s22, %s1923_s17  ;;  %p1929_p5 = scmp.lt.s32.totalorder %s1923_s17, %s1923_s17 }
  0x10   :  { %p1930_p6 = por %p1929_p5, %p1928_p4 }
  0x12   :  { %p1931_p7 = pnand %p1930_p6, %p1924_p3 }
  0x14   :  { %1934 = shalt.err (!%p1931_p7)
}
  0x15   :  { %s2033_s18 = smov 64   ;;  %s2034_s19 = smov 4  }
  0x16   :  { %54 = dma.hbm_to_vmem [thread:$0]  %s2471_s4, 256, %s49_s22, [#allocation6], %s2033_s18, %s2033_s18, %s2034_s19  }
  0x17   :  { %s1935_s26 = scalar_lea.hbm %s2469_s2, 256 }
  0x18   :  { %p1936_p8 = scmp.ne.s32.totalorder %s2469_s2, %s1935_s26  ;;  %p1939_p9 = scmp.lt.u32.totalorder %s1935_s26, %s2469_s2 }
  0x1a   :  { %p1941_p10 = pnand %p1939_p9, %p1936_p8 }
  0x1c   :  { %1944 = shalt.err (!%p1941_p10)
}
  0x1d   :  { %s1945_s0 = scalar_lea.vmem %s2133_s24, 256  ;;  %p1950_p12 = scmp.lt.s32.totalorder %s2133_s24, %s2133_s24 }
  0x1e   :  { %p1946_p11 = scmp.ne.s32.totalorder %s2133_s24, %s1945_s0  ;;  %p1951_p13 = scmp.lt.s32.totalorder %s1945_s0, %s1945_s0 }
  0x20   :  { %p1952_p0 = por %p1951_p13, %p1950_p12 }
  0x22   :  { %p1953_p1 = pnand %p1952_p0, %p1946_p11 }
  0x24   :  { %1956 = shalt.err (!%p1953_p1)
}
  0x25   :  { %40 = dma.hbm_to_vmem [thread:$0]  %s2469_s2, 256, %s2133_s24, [#allocation3], %s2033_s18, %s2033_s18, %s2034_s19  }
  0x26   :  { %s2035_s17 = smov [#allocation7]   ;;  %s2036_s21 = smov [#allocation8]  }
  0x27   :  { %s62_s20 = sshll.u32 %s2035_s17, 4  ;;  %s76_s23 = sshll.u32 %s2036_s21, 4  ;;  %s63_s20 = int_to_ptr.vmem [resolvable:$true] %s62_s20  ;;  %s2170_s23 = int_to_ptr.vmem [resolvable:$true] %s76_s23 }
  0x28   :  { %s1957_s27 = scalar_lea.hbm %s2473_s6, 256 }
  0x29   :  { %p1958_p2 = scmp.ne.s32.totalorder %s2473_s6, %s1957_s27  ;;  %p1961_p3 = scmp.lt.u32.totalorder %s1957_s27, %s2473_s6 }
  0x2b   :  { %p1963_p4 = pnand %p1961_p3, %p1958_p2 }
  0x2d   :  { %1966 = shalt.err (!%p1963_p4)
}
  0x2e   :  { %s1967_s2 = scalar_lea.vmem %s63_s20, 256  ;;  %p1972_p6 = scmp.lt.s32.totalorder %s63_s20, %s63_s20 }
  0x2f   :  { %p1968_p5 = scmp.ne.s32.totalorder %s63_s20, %s1967_s2  ;;  %p1973_p7 = scmp.lt.s32.totalorder %s1967_s2, %s1967_s2 }
  0x31   :  { %p1974_p8 = por %p1973_p7, %p1972_p6 }
  0x33   :  { %p1975_p9 = pnand %p1974_p8, %p1968_p5 }
  0x35   :  { %1978 = shalt.err (!%p1975_p9)
}
  0x36   :  { %68 = dma.hbm_to_vmem [thread:$0]  %s2473_s6, 256, %s63_s20, [#allocation6], %s2033_s18, %s2033_s18, %s2034_s19  }
  0x37   :  { %s1979_s21 = scalar_lea.hbm %s2475_s8, 256 }
  0x38   :  { %p1980_p10 = scmp.ne.s32.totalorder %s2475_s8, %s1979_s21  ;;  %p1983_p11 = scmp.lt.u32.totalorder %s1979_s21, %s2475_s8 }
  0x3a   :  { %p1985_p12 = pnand %p1983_p11, %p1980_p10 }
  0x3c   :  { %1988 = shalt.err (!%p1985_p12)
}
  0x3d   :  { %s1989_s29 = scalar_lea.vmem %s2170_s23, 256  ;;  %p1994_p0 = scmp.lt.s32.totalorder %s2170_s23, %s2170_s23 }
  0x3e   :  { %p1990_p13 = scmp.ne.s32.totalorder %s2170_s23, %s1989_s29  ;;  %p1995_p1 = scmp.lt.s32.totalorder %s1989_s29, %s1989_s29 }
  0x40   :  { %p1996_p2 = por %p1995_p1, %p1994_p0 }
  0x42   :  { %p1997_p3 = pnand %p1996_p2, %p1990_p13 }
  0x44   :  { %2000 = shalt.err (!%p1997_p3)
}
  0x45   :  { %82 = dma.hbm_to_vmem [thread:$0]  %s2475_s8, 256, %s2170_s23, [#allocation9], %s2033_s18, %s2033_s18, %s2034_s19  }
  0x46   :  { %2023 = dma.done.wait [#allocation3], 256  }
  0x47   :  { %2024 = vsyncadd [#allocation3], 4294967040 }
  0x48   :  { %2025 = dma.done.wait [#allocation6], 512  }
  0x49   :  { %2026 = vsyncadd [#allocation6], 4294966784 }
  0x4a   :  { %2027 = dma.done.wait [#allocation9], 256  }
  0x4b   :  { %2028 = vsyncadd [#allocation9], 4294967040  ;;  %v2037_v0 = vmov 0.0   ;;  %vm2038_vm0 = vmmov 0   ;;  %v1861_v1 = vld [vmem:[#allocation2] sm:$0xff]   ;;  %v1862_v2 = vld [vmem:[#allocation2 + $0x8] sm:$0xff]  }
  0x4c   :  { %1644 = vmatprep.subr.bf16.mxu1 %v2037_v0  ;;  %1648 = vmatprep.mubr.msk.bf16.mxu1 %vm2038_vm0, %v2037_v0  ;;  %s2486_s19 = sld [smem:[#allocation15_spill]]  ;;  %v1863_v5 = vld [vmem:[#allocation5] sm:$0xff]   ;;  %v112_v6 = vld [vmem:[%s2468_s1] sm:$0xff]  ;;  %v113_v8 = vld [vmem:[%s2468_s1 + $0x8] sm:$0xff]  ;;  %vm140_vm1 = vcmask 261120   ;;  %vm341_vm2 = vcmask 64512  }
  0x4d   :  { %1660 = vmatprep.subr.bf16.mxu0 %v2037_v0  ;;  %1662 = vmatprep.mubr.msk.bf16.mxu0 %vm2038_vm0, %v2037_v0  ;;  %v1864_v9 = vld [vmem:[#allocation5 + $0x8] sm:$0xff]   ;;  %v185_v10 = vpack.c.bf16 %v113_v8, %v112_v6  ;;  %v114_v11 = vld [vmem:[%s2468_s1 + $0x10] sm:$0xff]  ;;  %v1551_v14 = vld [vmem:[%s2470_s3] ss:$0 sm:$0xff]  ;;  %s2040_s3 = smov 112   ;;  %s2042_s6 = smov 96  }
  0x4e   :  { %1645 = vmatpush3.bf16.msra.mxu1 %v1861_v1  ;;  %v115_v12 = vld [vmem:[%s2468_s1 + $0x18] sm:$0xff]  ;;  %s2039_s1 = smov 120   ;;  %v1555_v23 = vld [vmem:[%s2472_s5] ss:$0 sm:$0xff]  ;;  %s2041_s5 = smov 104   ;;  %vm710_vm3 = vcmask 130048  }
  0x4f   :  { %1646 = vmatprep.subr.bf16.mxu1 %v2037_v0  ;;  %v186_v13 = vpack.c.bf16 %v115_v12, %v114_v11  ;;  %s2043_s20 = smov 8   ;;  %s2044_s8 = smov 16   ;;  %vm1211_vm4 = vcmask 195584   ;;  %vm1439_vm5 = vcmask 523264  }
  0x50   :  { %s2045_s18 = smov 24  }
  0x52   :  { %v2216_v3 = vld [vmem:[%s2486_s19] sm:$0xff]  ;;  %v2221_v4 = vld [vmem:[%s2486_s19 + $0x8] sm:$0xff]  ;;  %1647 = vmatpush3.bf16.msra.mxu1 %v1862_v2 }
  0x53   :  { %v116_v7 = vpack.c.bf16 %v2221_v4, %v2216_v3  ;;  %1652 = vmatprep.subr.bf16.mxu1 %v1863_v5 }
  0x55   :  { %1649 = vmatmul.mubr.msk.bf16.vlgmr.msra.gmra.mrb[0].mxu1 %vm140_vm1, %v116_v7 }
  0x56   :  { %1653 = vmatpush3.bf16.msra.mxu1 %v1863_v5  ;;  %1656 = vmatprep.mubr.msk.bf16.mxu1 %vm140_vm1, %v185_v10 }
  0x57   :  { %1654 = vmatprep.subr.bf16.mxu1 %v1864_v9 }
  0x5a   :  { %1655 = vmatpush3.bf16.msra.mxu1 %v1864_v9 }
  0x5b   :  { %1666 = vmatprep.subr.bf16.mxu1 %v2037_v0 }
  0x5d   :  { %1657 = vmatmul.mubr.msk.bf16.vlgmr.msra.gmra.mrb[4].mxu1 %vm140_vm1, %v186_v13 }
  0x5e   :  { %1668 = vmatprep.mubr.msk.bf16.mxu1 %vm2038_vm0, %v2037_v0 }
 0x128   :  { %v178_v15 = vpop.f32.mrb[0].mxu1 }
 0x129   :  { %v1650_v16 = vpop.f32.mrb[1].mxu1  ;;  %v179_v18 = vadd.f32 %v1551_v14, %v178_v15 }
 0x12a   :  { %v181_v17 = vpop.f32.mrb[2].mxu1 }
 0x12b   :  { %v182_v19 = vadd.f32 %v1551_v14, %v181_v17  ;;  %v1651_v20 = vpop.f32.mrb[3].mxu1  ;;  %v285_v38 = vpack.c.bf16 %v179_v18, %v179_v18 }
 0x12d   :  { %v1811_v21 = vpack.i.bf16 %v182_v19, %v179_v18  ;;  %v286_v37 = vpack.c.bf16 %v182_v19, %v182_v19 }
 0x12f   :  { %1812 = vrot.lane.b32.xlu1 %v1811_v21, %s2039_s1 }
 0x130   :  { %v1658_v22 = vpop.f32.mrb[4].mxu1 }
 0x131   :  { %v250_v24 = vpop.f32.mrb[5].mxu1  ;;  %v259_v26 = vadd.f32 %v1658_v22, %v1555_v23 }
 0x132   :  { %v1659_v25 = vpop.f32.mrb[6].mxu1  ;;  %v251_v29 = vadd.f32 %v1555_v23, %v250_v24 }
 0x133   :  { %v262_v27 = vadd.f32 %v1659_v25, %v1555_v23  ;;  %v253_v28 = vpop.f32.mrb[7].mxu1 }
 0x134   :  { %v254_v30 = vadd.f32 %v1555_v23, %v253_v28 }
 0x135   :  { %v334_v31 = vpack.c.bf16 %v262_v27, %v259_v26  ;;  %v1806_v32 = vpack.i.bf16 %v262_v27, %v259_v26 }
 0x136   :  { %v1821_v33 = vpack.i.bf16 %v254_v30, %v251_v29  ;;  %v333_v34 = vpack.c.bf16 %v254_v30, %v251_v29 }
 0x137   :  { %v392_v35 = vsel %vm341_vm2, %v334_v31, 0 }
 0x138   :  { %1667 = vmatpush3.bf16.xpose.msra.mxu1 %v392_v35  ;;  %1822 = vrot.lane.b32.xlu1 %v1821_v33, %s2040_s3  ;;  %v346_v36 = vsel %vm341_vm2, %v333_v34, 0 }
 0x139   :  { %1802 = vrot.lane.b32.xlu0 %v1821_v33, %s2039_s1  ;;  %1661 = vmatpush3.bf16.xpose.msra.mxu0 %v346_v36 }
 0x13a   :  { %1672 = vmatprep.subr.bf16.mxu0 %v2037_v0  ;;  %1678 = vmatprep.subr.bf16.mxu1 %v2037_v0 }
 0x13c   :  { %1827 = vrot.lane.b32.xlu1 %v1811_v21, %s2040_s3 }
 0x13d   :  { %1807 = vrot.lane.b32.xlu0 %v1806_v32, %s2039_s1 }
 0x13f   :  { %1669 = vmatmul.mubr.msk.bf16.vlgmr.msra.gmra.mrb[8].mxu1 %vm341_vm2, %v286_v37 }
 0x140   :  { %1837 = vrot.lane.b32.xlu1 %v1806_v32, %s2041_s5  ;;  %1663 = vmatmul.mubr.msk.bf16.vlgmr.msra.gmra.mrb[0].mxu0 %vm341_vm2, %v285_v38 }
 0x141   :  { %1817 = vrot.lane.b32.xlu0 %v1806_v32, %s2040_s3  ;;  %1674 = vmatprep.mubr.msk.bf16.mxu0 %vm2038_vm0, %v2037_v0  ;;  %s2046_s3 = smov [#allocation10]  }
 0x142   :  { %1680 = vmatprep.mubr.msk.bf16.mxu1 %vm2038_vm0, %v2037_v0 }
 0x144   :  { %855 = vrot.lane.b32.xlu1 %v334_v31, %s2042_s6 }
 0x145   :  { %1832 = vrot.lane.b32.xlu0 %v1821_v33, %s2041_s5 }
 0x149   :  { %1842 = vrot.lane.b32.xlu0 %v1811_v21, %s2041_s5  ;;  %s1537_s5 = sshll.u32 %s2046_s3, 4  ;;  %s1538_s5 = int_to_ptr.vmem [resolvable:$true] %s1537_s5 }
 0x14a   :  { %p2006_p5 = scmp.lt.s32.totalorder %s1538_s5, %s1538_s5 }
 0x14d   :  { %808 = vrot.lane.b32.xlu0 %v333_v34, %s2042_s6 }
 0x1a1   :  { %v1813_v39 = vpop.permute.xlu1 %1812 }
 0x1a2   :  { %v1814_v51 = vunpack.i.l.bf16 %v1813_v39  ;;  %v1815_v59 = vunpack.i.h.bf16 %v1813_v39 }
 0x1a4   :  { %v287_v60 = vpack.c.bf16 %v1814_v51, %v1814_v51  ;;  %v288_v6 = vpack.c.bf16 %v1815_v59, %v1815_v59 }
 0x1aa   :  { %v1823_v41 = vpop.permute.xlu1 %1822 }
 0x1ab   :  { %v1803_v40 = vpop.permute.xlu0 %1802  ;;  %v1825_v45 = vunpack.i.h.bf16 %v1823_v41  ;;  %v1824_v47 = vunpack.i.l.bf16 %v1823_v41 }
 0x1ac   :  { %v1805_v42 = vunpack.i.h.bf16 %v1803_v40  ;;  %v1804_v43 = vunpack.i.l.bf16 %v1803_v40 }
 0x1ad   :  { %v2269_v55 = vpack.c.bf16 %v1825_v45, %v1824_v47 }
 0x1ae   :  { %v2262_v44 = vpack.c.bf16 %v1805_v42, %v1804_v43  ;;  %v1828_v53 = vpop.permute.xlu1 %1827 }
 0x1af   :  { %v1808_v46 = vpop.permute.xlu0 %1807  ;;  %v530_v2 = vsel %vm341_vm2, %v2269_v55, 0  ;;  %v1829_v7 = vunpack.i.l.bf16 %v1828_v53  ;;  %v1830_v12 = vunpack.i.h.bf16 %v1828_v53 }
 0x1b0   :  { %v1810_v48 = vunpack.i.h.bf16 %v1808_v46  ;;  %v1809_v49 = vunpack.i.l.bf16 %v1808_v46  ;;  %v438_v50 = vsel %vm341_vm2, %v2262_v44, 0 }
 0x1b1   :  { %1673 = vmatpush3.bf16.xpose.msra.mxu0 %v438_v50  ;;  %v289_v13 = vpack.c.bf16 %v1829_v7, %v1829_v7  ;;  %v290_v17 = vpack.c.bf16 %v1830_v12, %v1830_v12 }
 0x1b2   :  { %v2266_v52 = vpack.c.bf16 %v1810_v48, %v1809_v49  ;;  %1684 = vmatprep.subr.bf16.mxu0 %v2037_v0  ;;  %v1838_v5 = vpop.permute.xlu1 %1837 }
 0x1b3   :  { %v1818_v54 = vpop.permute.xlu0 %1817  ;;  %v1840_v8 = vunpack.i.h.bf16 %v1838_v5  ;;  %v1839_v9 = vunpack.i.l.bf16 %v1838_v5 }
 0x1b4   :  { %v1820_v56 = vunpack.i.h.bf16 %v1818_v54  ;;  %v1819_v57 = vunpack.i.l.bf16 %v1818_v54  ;;  %v484_v58 = vsel %vm341_vm2, %v2266_v52, 0 }
 0x1b5   :  { %1679 = vmatpush3.bf16.xpose.msra.mxu1 %v484_v58  ;;  %v2290_v15 = vpack.c.bf16 %v1840_v8, %v1839_v9 }
 0x1b6   :  { %1690 = vmatprep.subr.bf16.mxu1 %v2037_v0  ;;  %v2274_v62 = vpack.c.bf16 %v1820_v56, %v1819_v57  ;;  %v856_v24 = vpop.permute.xlu1 %855 }
 0x1b7   :  { %v1833_v61 = vpop.permute.xlu0 %1832  ;;  %v668_v19 = vsel %vm341_vm2, %v2290_v15, 0 }
 0x1b8   :  { %v1835_v63 = vunpack.i.h.bf16 %v1833_v61  ;;  %v1834_v1 = vunpack.i.l.bf16 %v1833_v61  ;;  %1675 = vmatmul.mubr.msk.bf16.vlgmr.msra.gmra.mrb[4].mxu0 %vm341_vm2, %v287_v60  ;;  %v576_v11 = vsel %vm341_vm2, %v2274_v62, 0 }
 0x1b9   :  { %1685 = vmatpush3.bf16.xpose.msra.mxu0 %v530_v2  ;;  %1686 = vmatprep.mubr.msk.bf16.mxu0 %vm2038_vm0, %v2037_v0 }
 0x1ba   :  { %1696 = vmatprep.subr.bf16.mxu0 %v2037_v0  ;;  %v2282_v10 = vpack.c.bf16 %v1835_v63, %v1834_v1 }
 0x1bb   :  { %v1843_v14 = vpop.permute.xlu0 %1842 }
 0x1bc   :  { %1681 = vmatmul.mubr.msk.bf16.vlgmr.msra.gmra.mrb[12].mxu1 %vm341_vm2, %v288_v6  ;;  %v622_v16 = vsel %vm341_vm2, %v2282_v10, 0  ;;  %v1844_v18 = vunpack.i.l.bf16 %v1843_v14  ;;  %v1845_v20 = vunpack.i.h.bf16 %v1843_v14 }
 0x1bd   :  { %1691 = vmatpush3.bf16.xpose.msra.mxu1 %v576_v11  ;;  %1692 = vmatprep.mubr.msk.bf16.mxu1 %vm2038_vm0, %v2037_v0 }
 0x1be   :  { %1702 = vmatprep.subr.bf16.mxu1 %v2037_v0  ;;  %v291_v21 = vpack.c.bf16 %v1844_v18, %v1844_v18  ;;  %v292_v23 = vpack.c.bf16 %v1845_v20, %v1845_v20 }
 0x1bf   :  { %v809_v22 = vpop.permute.xlu0 %808 }
 0x1c0   :  { %1687 = vmatmul.mubr.msk.bf16.vlgmr.msra.gmra.mrb[8].mxu0 %vm341_vm2, %v289_v13 }
 0x1c1   :  { %1697 = vmatpush3.bf16.xpose.msra.mxu0 %v622_v16  ;;  %1698 = vmatprep.mubr.msk.bf16.mxu0 %vm2038_vm0, %v2037_v0 }
 0x1c2   :  { %1708 = vmatprep.subr.bf16.mxu0 %v2037_v0 }
 0x1c4   :  { %1693 = vmatmul.mubr.msk.bf16.vlgmr.msra.gmra.mrb[16].mxu1 %vm341_vm2, %v290_v17 }
 0x1c5   :  { %1703 = vmatpush3.bf16.xpose.msra.mxu1 %v668_v19  ;;  %1704 = vmatprep.mubr.msk.bf16.mxu1 %vm2038_vm0, %v2037_v0 }
 0x1c6   :  { %1714 = vmatprep.subr.bf16.mxu1 %v2037_v0 }
 0x1c8   :  { %1699 = vmatmul.mubr.msk.bf16.vlgmr.msra.gmra.mrb[12].mxu0 %vm341_vm2, %v291_v21 }
 0x1c9   :  { %1709 = vmatpush3.bf16.msra.mxu0 %v809_v22  ;;  %1710 = vmatprep.mubr.msk.bf16.mxu0 %vm2038_vm0, %v2037_v0 }
 0x1ca   :  { %1720 = vmatprep.subr.bf16.mxu0 %v2037_v0 }
 0x1cc   :  { %1705 = vmatmul.mubr.msk.bf16.vlgmr.msra.gmra.mrb[20].mxu1 %vm341_vm2, %v292_v23 }
 0x1cd   :  { %1715 = vmatpush3.bf16.msra.mxu1 %v856_v24  ;;  %1716 = vmatprep.mubr.msk.bf16.mxu1 %vm2038_vm0, %v2037_v0 }
 0x1ce   :  { %1726 = vmatprep.subr.bf16.mxu1 %v2037_v0 }
 0x212   :  { %v428_v25 = vpop.f32.mrb[8].mxu1 }
 0x213   :  { %v382_v26 = vpop.f32.mrb[0].mxu0  ;;  %v1670_v27 = vpop.f32.mrb[9].mxu1  ;;  %v714_v28 = vsel %vm710_vm3, %v428_v25, -inf }
 0x214   :  { %v431_v29 = vpop.f32.mrb[10].mxu1  ;;  %715 = vmax.xlane.f32.xlu0 %v714_v28  ;;  %v1664_v30 = vpop.f32.mrb[1].mxu0  ;;  %v711_v31 = vsel %vm710_vm3, %v382_v26, -inf }
 0x215   :  { %v1671_v32 = vpop.f32.mrb[11].mxu1  ;;  %712 = vmax.xlane.f32.xlu1 %v711_v31  ;;  %v385_v33 = vpop.f32.mrb[2].mxu0 }
 0x216   :  { %v1665_v34 = vpop.f32.mrb[3].mxu0 }
 0x28b   :  { %v474_v35 = vpop.f32.mrb[4].mxu0 }
 0x28c   :  { %v1676_v36 = vpop.f32.mrb[5].mxu0  ;;  %v717_v37 = vsel %vm710_vm3, %v474_v35, -inf }
 0x28d   :  { %718 = vmax.xlane.f32.xlu0 %v717_v37  ;;  %v477_v38 = vpop.f32.mrb[6].mxu0 }
 0x28e   :  { %v1677_v39 = vpop.f32.mrb[7].mxu0 }
 0x28f   :  { %v520_v40 = vpop.f32.mrb[12].mxu1 }
 0x290   :  { %v1682_v41 = vpop.f32.mrb[13].mxu1  ;;  %v720_v42 = vsel %vm710_vm3, %v520_v40, -inf }
 0x291   :  { %v523_v43 = vpop.f32.mrb[14].mxu1  ;;  %721 = vmax.xlane.f32.xlu1 %v720_v42 }
 0x292   :  { %v1683_v45 = vpop.f32.mrb[15].mxu1 }
 0x293   :  { %v2316_v46 = vpop.f32.mrb[8].mxu0 }
 0x294   :  { %v1688_v47 = vpop.f32.mrb[9].mxu0  ;;  %v723_v48 = vsel %vm710_vm3, %v2316_v46, -inf }
 0x295   :  { %724 = vmax.xlane.f32.xlu0 %v723_v48  ;;  %v569_v49 = vpop.f32.mrb[10].mxu0 }
 0x296   :  { %v1689_v50 = vpop.f32.mrb[11].mxu0 }
 0x297   :  { %v612_v51 = vpop.f32.mrb[16].mxu1 }
 0x298   :  { %v1694_v53 = vpop.f32.mrb[17].mxu1  ;;  %v726_v54 = vsel %vm710_vm3, %v612_v51, -inf }
 0x299   :  { %v615_v56 = vpop.f32.mrb[18].mxu1  ;;  %727 = vmax.xlane.f32.xlu1 %v726_v54 }
 0x29a   :  { %v1695_v57 = vpop.f32.mrb[19].mxu1 }
 0x29b   :  { %v2321_v58 = vpop.f32.mrb[12].mxu0 }
 0x29c   :  { %v1700_v59 = vpop.f32.mrb[13].mxu0  ;;  %v729_v60 = vsel %vm710_vm3, %v2321_v58, -inf }
 0x29d   :  { %730 = vmax.xlane.f32.xlu0 %v729_v60  ;;  %v661_v61 = vpop.f32.mrb[14].mxu0 }
 0x29e   :  { %v1701_v63 = vpop.f32.mrb[15].mxu0 }
 0x29f   :  { %v704_v1 = vpop.f32.mrb[20].mxu1 }
 0x2a0   :  { %v1706_v2 = vpop.f32.mrb[21].mxu1  ;;  %v732_v5 = vsel %vm710_vm3, %v704_v1, -inf }
 0x2a1   :  { %v707_v6 = vpop.f32.mrb[22].mxu1  ;;  %733 = vmax.xlane.f32.xlu1 %v732_v5  ;;  %v716_v11 = vpop.xlane.xlu0 %715 }
 0x2a2   :  { %v1707_v7 = vpop.f32.mrb[23].mxu1  ;;  %v713_v8 = vpop.xlane.xlu1 %712  ;;  %v736_v12 = vsub.f32 %v428_v25, %v716_v11 }
 0x2a3   :  { %v735_v9 = vsub.f32 %v382_v26, %v713_v8 }
 0x2a4   :  { %v745_v14 = vmul.f32 1.442695, %v736_v12 }
 0x2a5   :  { %v743_v13 = vmul.f32 1.442695, %v735_v9 }
 0x2a7   :  { %1873 = vpow2.f32 %v743_v13 }
 0x2a8   :  { %1875 = vpow2.f32 %v745_v14 }
 0x2b1   :  { %v1874_v16 = vpop.eup %1873 }
 0x2b2   :  { %902 = vrot.lane.b32.xlu1 %v2262_v44, %s2042_s6  ;;  %v759_v17 = vsel %vm710_vm3, %v1874_v16, 0.0  ;;  %v1876_v18 = vpop.eup %1875 }
 0x2b3   :  { %949 = vrot.lane.b32.xlu0 %v2266_v52, %s2042_s6  ;;  %v762_v19 = vsel %vm710_vm3, %v1876_v18, 0.0 }
 0x2d2   :  { %760 = vadd.xlane.f32.xlu0 %v759_v17 }
 0x2d6   :  { %763 = vadd.xlane.f32.xlu1 %v762_v19 }
 0x2e7   :  { %996 = vrot.lane.b32.xlu1 %v2269_v55, %s2042_s6 }
 0x31a   :  { %v719_v44 = vpop.xlane.xlu0 %718 }
 0x31b   :  { %v737_v52 = vsub.f32 %v474_v35, %v719_v44 }
 0x31d   :  { %v747_v20 = vmul.f32 1.442695, %v737_v52 }
 0x31e   :  { %v722_v21 = vpop.xlane.xlu1 %721 }
 0x31f   :  { %1877 = vpow2.f32 %v747_v20  ;;  %v738_v22 = vsub.f32 %v520_v40, %v722_v21 }
 0x321   :  { %v749_v23 = vmul.f32 1.442695, %v738_v22 }
 0x322   :  { %v725_v37 = vpop.xlane.xlu0 %724 }
 0x323   :  { %1879 = vpow2.f32 %v749_v23  ;;  %v739_v38 = vsub.f32 %v2316_v46, %v725_v37 }
 0x325   :  { %v751_v40 = vmul.f32 1.442695, %v739_v38 }
 0x326   :  { %v728_v24 = vpop.xlane.xlu1 %727 }
 0x327   :  { %v740_v25 = vsub.f32 %v612_v51, %v728_v24 }
 0x329   :  { %v1878_v26 = vpop.eup %1877  ;;  %v753_v27 = vmul.f32 1.442695, %v740_v25 }
 0x32a   :  { %v765_v28 = vsel %vm710_vm3, %v1878_v26, 0.0  ;;  %v731_v39 = vpop.xlane.xlu0 %730 }
 0x32b   :  { %1881 = vpow2.f32 %v753_v27  ;;  %766 = vadd.xlane.f32.xlu0 %v765_v28  ;;  %v741_v41 = vsub.f32 %v2321_v58, %v731_v39 }
 0x32d   :  { %v1880_v29 = vpop.eup %1879  ;;  %v755_v42 = vmul.f32 1.442695, %v741_v41 }
 0x32e   :  { %v734_v30 = vpop.xlane.xlu1 %733  ;;  %v768_v55 = vsel %vm710_vm3, %v1880_v29, 0.0  ;;  %v950_v43 = vpop.permute.xlu0 %949 }
 0x32f   :  { %v742_v31 = vsub.f32 %v704_v1, %v734_v30  ;;  %769 = vadd.xlane.f32.xlu1 %v768_v55 }
 0x331   :  { %v757_v32 = vmul.f32 1.442695, %v742_v31 }
 0x332   :  { %v903_v47 = vpop.permute.xlu1 %902 }
 0x333   :  { %1883 = vpow2.f32 %v757_v32 }
 0x334   :  { %1885 = vpow2.f32 %v751_v40 }
 0x335   :  { %v2336_v33 = vpop.eup %1881  ;;  %1887 = vpow2.f32 %v755_v42 }
 0x336   :  { %v774_v34 = vsel %vm710_vm3, %v2336_v33, 0.0 }
 0x337   :  { %775 = vadd.xlane.f32.xlu1 %v774_v34 }
 0x33d   :  { %v2340_v35 = vpop.eup %1883 }
 0x33e   :  { %v780_v36 = vsel %vm710_vm3, %v2340_v35, 0.0  ;;  %v2350_v45 = vpop.eup %1885 }
 0x33f   :  { %781 = vadd.xlane.f32.xlu1 %v780_v36  ;;  %v2354_v49 = vpop.eup %1887 }
 0x340   :  { %v777_v50 = vsel %vm710_vm3, %v2354_v49, 0.0 }
 0x341   :  { %1043 = vrot.lane.b32.xlu0 %v2274_v62, %s2042_s6  ;;  %v771_v62 = vsel %vm710_vm3, %v2350_v45, 0.0 }
 0x350   :  { %1090 = vrot.lane.b32.xlu1 %v2282_v10, %s2042_s6 }
 0x35f   :  { %v761_v48 = vpop.xlane.xlu0 %760 }
 0x360   :  { %1889 = vrcp.f32 %v761_v48  ;;  %772 = vadd.xlane.f32.xlu0 %v771_v62 }
 0x363   :  { %v764_v46 = vpop.xlane.xlu1 %763 }
 0x364   :  { %1891 = vrcp.f32 %v764_v46  ;;  %778 = vadd.xlane.f32.xlu0 %v777_v50  ;;  %v1866_v50 = vld [vmem:[#allocation7 + $0x8] sm:$0xff]  }
 0x367   :  { %v997_v58 = vpop.permute.xlu1 %996 }
 0x36a   :  { %v1890_v10 = vpop.eup %1889 }
 0x36b   :  { %v791_v51 = vmul.f32 %v1890_v10, %v1874_v16 }
 0x36d   :  { %v799_v53 = vpack.c.bf16 %v791_v51, %v791_v51 }
 0x36e   :  { %v1892_v54 = vpop.eup %1891 }
 0x36f   :  { %v792_v56 = vmul.f32 %v1892_v54, %v1876_v18  ;;  %1711 = vmatmul.mubr.msk.bf16.vlgmr.msra.gmra.mrb[16].mxu0 %vm710_vm3, %v799_v53 }
 0x370   :  { %1721 = vmatpush3.bf16.msra.mxu0 %v903_v47  ;;  %1722 = vmatprep.mubr.msk.bf16.mxu0 %vm2038_vm0, %v2037_v0  ;;  %v1865_v47 = vld [vmem:[#allocation7] sm:$0xff]  }
 0x371   :  { %v800_v57 = vpack.c.bf16 %v792_v56, %v792_v56  ;;  %1732 = vmatprep.subr.bf16.mxu0 %v2037_v0 }
 0x373   :  { %1717 = vmatmul.mubr.msk.bf16.vlgmr.msra.gmra.mrb[24].mxu1 %vm710_vm3, %v800_v57 }
 0x374   :  { %1727 = vmatpush3.bf16.msra.mxu1 %v950_v43  ;;  %1728 = vmatprep.mubr.msk.bf16.mxu1 %vm2038_vm0, %v2037_v0 }
 0x375   :  { %1738 = vmatprep.subr.bf16.mxu1 %v2037_v0 }
 0x37a   :  { %1137 = vrot.lane.b32.xlu0 %v2290_v15, %s2042_s6  ;;  %s2001_s6 = scalar_lea.vmem %s1538_s5, 256 }
 0x37b   :  { %p2002_p4 = scmp.ne.s32.totalorder %s1538_s5, %s2001_s6  ;;  %p2007_p6 = scmp.lt.s32.totalorder %s2001_s6, %s2001_s6 }
 0x37d   :  { %p2008_p7 = por %p2007_p6, %p2006_p5 }
 0x37f   :  { %p2009_p8 = pnand %p2008_p7, %p2002_p4 }
 0x3b8   :  { %v767_v59 = vpop.xlane.xlu0 %766 }
 0x3b9   :  { %1893 = vrcp.f32 %v767_v59 }
 0x3bc   :  { %v770_v60 = vpop.xlane.xlu1 %769  ;;  %v1044_v15 = vpop.permute.xlu0 %1043 }
 0x3bd   :  { %1895 = vrcp.f32 %v770_v60 }
 0x3c3   :  { %v1894_v61 = vpop.eup %1893 }
 0x3c4   :  { %v793_v63 = vmul.f32 %v1894_v61, %v1878_v26  ;;  %v776_v1 = vpop.xlane.xlu1 %775 }
 0x3c5   :  { %1897 = vrcp.f32 %v776_v1 }
 0x3c6   :  { %v801_v2 = vpack.c.bf16 %v793_v63, %v793_v63 }
 0x3c7   :  { %v1896_v5 = vpop.eup %1895 }
 0x3c8   :  { %v794_v6 = vmul.f32 %v1896_v5, %v1880_v29  ;;  %1723 = vmatmul.mubr.msk.bf16.vlgmr.msra.gmra.mrb[20].mxu0 %vm710_vm3, %v801_v2 }
 0x3c9   :  { %1733 = vmatpush3.bf16.msra.mxu0 %v997_v58  ;;  %1734 = vmatprep.mubr.msk.bf16.mxu0 %vm2038_vm0, %v2037_v0 }
 0x3ca   :  { %v802_v7 = vpack.c.bf16 %v794_v6, %v794_v6  ;;  %1744 = vmatprep.subr.bf16.mxu0 %v2037_v0 }
 0x3cc   :  { %1729 = vmatmul.mubr.msk.bf16.vlgmr.msra.gmra.mrb[28].mxu1 %vm710_vm3, %v802_v7  ;;  %v782_v12 = vpop.xlane.xlu1 %781 }
 0x3cd   :  { %1739 = vmatpush3.bf16.msra.mxu1 %v1044_v15  ;;  %1740 = vmatprep.mubr.msk.bf16.mxu1 %vm2038_vm0, %v2037_v0  ;;  %1899 = vrcp.f32 %v782_v12 }
 0x3ce   :  { %1750 = vmatprep.subr.bf16.mxu1 %v2037_v0 }
 0x3cf   :  { %v1898_v8 = vpop.eup %1897 }
 0x3d0   :  { %v796_v9 = vmul.f32 %v1898_v8, %v2336_v33  ;;  %v1091_v22 = vpop.permute.xlu1 %1090 }
 0x3d2   :  { %v804_v11 = vpack.c.bf16 %v796_v9, %v796_v9 }
 0x3d4   :  { %1741 = vmatmul.mubr.msk.bf16.vlgmr.msra.gmra.mrb[32].mxu1 %vm710_vm3, %v804_v11 }
 0x3d5   :  { %1752 = vmatprep.mubr.msk.bf16.mxu1 %vm2038_vm0, %v2037_v0 }
 0x3d7   :  { %v1900_v14 = vpop.eup %1899 }
 0x3d8   :  { %v798_v17 = vmul.f32 %v1900_v14, %v2340_v35 }
 0x3da   :  { %v806_v19 = vpack.c.bf16 %v798_v17, %v798_v17 }
 0x3ed   :  { %v773_v13 = vpop.xlane.xlu0 %772 }
 0x3ee   :  { %1901 = vrcp.f32 %v773_v13 }
 0x3f1   :  { %v779_v16 = vpop.xlane.xlu0 %778 }
 0x3f2   :  { %1903 = vrcp.f32 %v779_v16 }
 0x3f5   :  { %v1138_v18 = vpop.permute.xlu0 %1137 }
 0x3f6   :  { %1751 = vmatpush3.bf16.msra.mxu1 %v1138_v18 }
 0x3f7   :  { %1764 = vmatprep.subr.bf16.mxu1 %v2037_v0 }
 0x3f8   :  { %v1902_v44 = vpop.eup %1901 }
 0x3f9   :  { %v795_v52 = vmul.f32 %v1902_v44, %v2350_v45  ;;  %1753 = vmatmul.mubr.msk.bf16.vlgmr.msra.gmra.mrb[36].mxu1 %vm710_vm3, %v806_v19  ;;  %v1576_v19 = vld [vmem:[%s2474_s7] ss:$0 sm:$0xff] }
 0x3fa   :  { %1768 = vmatprep.mubr.msk.bf16.mxu1 %vm2038_vm0, %v2037_v0 }
 0x3fb   :  { %v803_v20 = vpack.c.bf16 %v795_v52, %v795_v52 }
 0x3fc   :  { %v1904_v21 = vpop.eup %1903 }
 0x3fd   :  { %1735 = vmatmul.mubr.msk.bf16.vlgmr.msra.gmra.mrb[24].mxu0 %vm710_vm3, %v803_v20  ;;  %v797_v23 = vmul.f32 %v1904_v21, %v2354_v49 }
 0x3fe   :  { %1745 = vmatpush3.bf16.msra.mxu0 %v1091_v22  ;;  %1746 = vmatprep.mubr.msk.bf16.mxu0 %vm2038_vm0, %v2037_v0 }
 0x3ff   :  { %1756 = vmatprep.subr.bf16.mxu0 %v2037_v0  ;;  %v805_v24 = vpack.c.bf16 %v797_v23, %v797_v23 }
 0x405   :  { %1747 = vmatmul.mubr.msk.bf16.vlgmr.msra.gmra.mrb[28].mxu0 %vm710_vm3, %v805_v24 }
 0x406   :  { %1760 = vmatprep.mubr.msk.bf16.mxu0 %vm2038_vm0, %v2037_v0  ;;  %1757 = vmatpush3.bf16.msra.mxu0 %v1865_v47 }
 0x407   :  { %1758 = vmatprep.subr.bf16.mxu0 %v2037_v0 }
 0x40a   :  { %1759 = vmatpush3.bf16.msra.mxu0 %v1866_v50 }
 0x40b   :  { %1772 = vmatprep.subr.bf16.mxu0 %v2037_v0 }
 0x442   :  { %v848_v25 = vpop.f32.mrb[16].mxu0 }
 0x443   :  { %v1712_v26 = vpop.f32.mrb[17].mxu0 }
 0x444   :  { %v851_v27 = vpop.f32.mrb[18].mxu0 }
 0x445   :  { %v1713_v28 = vpop.f32.mrb[19].mxu0 }
 0x446   :  { %v895_v29 = vpop.f32.mrb[24].mxu1 }
 0x447   :  { %v1718_v30 = vpop.f32.mrb[25].mxu1 }
 0x448   :  { %v898_v55 = vpop.f32.mrb[26].mxu1 }
 0x449   :  { %v1719_v31 = vpop.f32.mrb[27].mxu1 }
 0x49b   :  { %v942_v32 = vpop.f32.mrb[20].mxu0 }
 0x49c   :  { %v1724_v33 = vpop.f32.mrb[21].mxu0 }
 0x49d   :  { %v945_v34 = vpop.f32.mrb[22].mxu0 }
 0x49e   :  { %v1725_v35 = vpop.f32.mrb[23].mxu0 }
 0x49f   :  { %v989_v36 = vpop.f32.mrb[28].mxu1 }
 0x4a0   :  { %v1846_v37 = vpack.i.bf16 %v989_v36, %v942_v32  ;;  %v1730_v38 = vpop.f32.mrb[29].mxu1  ;;  %v1867_v36 = vld [vmem:[#allocation8] sm:$0xff]  }
 0x4a1   :  { %v992_v39 = vpop.f32.mrb[30].mxu1  ;;  %1765 = vmatpush3.bf16.msra.mxu1 %v1867_v36  ;;  %v1870_v38 = vld [vmem:[%s2477_s10 + $0x8] sm:$0xff]   ;;  %v1593_v36 = vld [vmem:[%s2482_s15] ss:$0 sm:$0xff] }
 0x4a2   :  { %v1731_v40 = vpop.f32.mrb[31].mxu1  ;;  %1847 = vrot.lane.b32.xlu1 %v1846_v37, %s2043_s20  ;;  %1766 = vmatprep.subr.bf16.mxu1 %v2037_v0  ;;  %v1869_v37 = vld [vmem:[%s2477_s10] sm:$0xff]  }
 0x4a7   :  { %v1083_v41 = vpop.f32.mrb[32].mxu1 }
 0x4a8   :  { %v1742_v42 = vpop.f32.mrb[33].mxu1 }
 0x4a9   :  { %v1086_v43 = vpop.f32.mrb[34].mxu1 }
 0x4aa   :  { %v1743_v45 = vpop.f32.mrb[35].mxu1 }
 0x4cc   :  { %v1177_v48 = vpop.f32.mrb[36].mxu1 }
 0x4cd   :  { %v1754_v62 = vpop.f32.mrb[37].mxu1 }
 0x4ce   :  { %v1180_v49 = vpop.f32.mrb[38].mxu1  ;;  %v1580_v62 = vld [vmem:[%s2479_s12] ss:$0 sm:$0xff] }
 0x4cf   :  { %v1755_v46 = vpop.f32.mrb[39].mxu1 }
 0x4d0   :  { %v1036_v10 = vpop.f32.mrb[24].mxu0 }
 0x4d1   :  { %v1851_v51 = vpack.i.bf16 %v1083_v41, %v1036_v10  ;;  %v1736_v53 = vpop.f32.mrb[25].mxu0  ;;  %v1581_v10 = vld [vmem:[%s2480_s13] ss:$0 sm:$0xff] }
 0x4d2   :  { %v1039_v54 = vpop.f32.mrb[26].mxu0 }
 0x4d3   :  { %1852 = vrot.lane.b32.xlu0 %v1851_v51, %s2044_s8  ;;  %v1737_v56 = vpop.f32.mrb[27].mxu0 }
 0x4d8   :  { %v1130_v57 = vpop.f32.mrb[28].mxu0 }
 0x4d9   :  { %v1856_v58 = vpack.i.bf16 %v1177_v48, %v1130_v57  ;;  %v1748_v59 = vpop.f32.mrb[29].mxu0  ;;  %v1871_v57 = vld [vmem:[%s2477_s10 + $0x10] sm:$0xff]  }
 0x4da   :  { %v1133_v60 = vpop.f32.mrb[30].mxu0  ;;  %v1582_v59 = vld [vmem:[%s2476_s9] ss:$0 sm:$0xff] }
 0x4db   :  { %1857 = vrot.lane.b32.xlu1 %v1856_v58, %s2045_s18  ;;  %v1749_v61 = vpop.f32.mrb[31].mxu0  ;;  %v1872_v58 = vld [vmem:[%s2477_s10 + $0x18] sm:$0xff]  }
 0x514   :  { %v1848_v63 = vpop.permute.xlu1 %1847 }
 0x515   :  { %v1850_v2 = vunpack.i.h.bf16 %v1848_v63  ;;  %v1849_v5 = vunpack.i.l.bf16 %v1848_v63 }
 0x517   :  { %v1208_v8 = vsel %vm341_vm2, %v895_v29, %v1850_v2  ;;  %v1207_v9 = vsel %vm341_vm2, %v848_v25, %v1849_v5 }
 0x545   :  { %v1853_v1 = vpop.permute.xlu0 %1852 }
 0x546   :  { %v1855_v6 = vunpack.i.h.bf16 %v1853_v1  ;;  %v1854_v7 = vunpack.i.l.bf16 %v1853_v1 }
 0x548   :  { %v1210_v13 = vsel %vm710_vm3, %v1208_v8, %v1855_v6  ;;  %v1209_v14 = vsel %vm710_vm3, %v1207_v9, %v1854_v7 }
 0x54d   :  { %v1858_v15 = vpop.permute.xlu1 %1857 }
 0x54e   :  { %v1860_v11 = vunpack.i.h.bf16 %v1858_v15  ;;  %v1859_v12 = vunpack.i.l.bf16 %v1858_v15 }
 0x550   :  { %v1213_v16 = vsel %vm1211_vm4, %v1210_v13, %v1860_v11  ;;  %v1212_v17 = vsel %vm1211_vm4, %v1209_v14, %v1859_v12 }
 0x551   :  { %v1214_v18 = vpack.c.bf16 %v1213_v16, %v1212_v17 }
 0x553   :  { %1761 = vmatmul.mubr.msk.bf16.vlgmr.msra.gmra.mrb[32].mxu0 %vm140_vm1, %v1214_v18 }
 0x554   :  { %1780 = vmatprep.mubr.msk.bf16.mxu0 %vm2038_vm0, %v2037_v0  ;;  %1773 = vmatpush3.bf16.msra.mxu0 %v1869_v37 }
 0x555   :  { %1774 = vmatprep.subr.bf16.mxu0 %v2037_v0 }
 0x558   :  { %1775 = vmatpush3.bf16.msra.mxu0 %v1870_v38 }
 0x559   :  { %1776 = vmatprep.subr.bf16.mxu0 %v2037_v0 }
 0x55c   :  { %1777 = vmatpush3.bf16.msra.mxu0 %v1871_v57 }
 0x55d   :  { %1778 = vmatprep.subr.bf16.mxu0 %v2037_v0  ;;  %v1586_v0 = vld [vmem:[%s2478_s11] ss:$0 sm:$0xff] }
 0x560   :  { %1779 = vmatpush3.bf16.msra.mxu0 %v1872_v58 }
 0x626   :  { %v1275_v44 = vpop.f32.mrb[32].mxu0 }
 0x627   :  { %v1276_v52 = vadd.f32 %v1576_v19, %v1275_v44  ;;  %v1762_v20 = vpop.f32.mrb[33].mxu0 }
 0x628   :  { %v1278_v21 = vpop.f32.mrb[34].mxu0 }
 0x629   :  { %v1279_v22 = vadd.f32 %v1576_v19, %v1278_v21  ;;  %v1763_v23 = vpop.f32.mrb[35].mxu0  ;;  %v1282_v24 = vadd.f32 %v1276_v52, %v2216_v3 }
 0x62b   :  { %v1286_v25 = vsel %vm140_vm1, %v1282_v24, 0.0  ;;  %v1283_v26 = vadd.f32 %v1279_v22, %v2221_v4  ;;  %v1868_v4 = vld [vmem:[#allocation8 + $0x8] sm:$0xff]  }
 0x62c   :  { %1287 = vadd.xlane.f32.xlu0 %v1286_v25  ;;  %1767 = vmatpush3.bf16.msra.mxu1 %v1868_v4 }
 0x62d   :  { %v1289_v27 = vsel %vm140_vm1, %v1283_v26, 0.0 }
 0x62e   :  { %1290 = vadd.xlane.f32.xlu1 %v1289_v27 }
 0x6b9   :  { %v1288_v28 = vpop.xlane.xlu0 %1287 }
 0x6ba   :  { %v1293_v29 = vmul.f32 0.03125, %v1288_v28 }
 0x6bb   :  { %v1291_v30 = vpop.xlane.xlu1 %1290 }
 0x6bc   :  { %v1295_v55 = vsub.f32 %v1282_v24, %v1293_v29  ;;  %v1294_v31 = vmul.f32 0.03125, %v1291_v30 }
 0x6be   :  { %v1296_v32 = vsub.f32 %v1283_v26, %v1294_v31  ;;  %v1297_v33 = vmul.f32 %v1295_v55, %v1295_v55 }
 0x6c0   :  { %v1299_v34 = vsel %vm140_vm1, %v1297_v33, 0.0  ;;  %v1298_v35 = vmul.f32 %v1296_v32, %v1296_v32 }
 0x6c1   :  { %1300 = vadd.xlane.f32.xlu0 %v1299_v34  ;;  %v1592_v34 = vld [vmem:[%s2481_s14] ss:$0 sm:$0xff] }
 0x6c2   :  { %v1302_v3 = vsel %vm140_vm1, %v1298_v35, 0.0 }
 0x6c5   :  { %1303 = vadd.xlane.f32.xlu0 %v1302_v3 }
 0x74e   :  { %v1301_v39 = vpop.xlane.xlu0 %1300 }
 0x74f   :  { %v1305_v40 = vmul.f32 0.03125, %v1301_v39 }
 0x751   :  { %v1307_v41 = vadd.f32 1e-05, %v1305_v40 }
 0x752   :  { %v1304_v42 = vpop.xlane.xlu0 %1303 }
 0x753   :  { %1905 = vrsqrt.f32 %v1307_v41  ;;  %v1306_v43 = vmul.f32 0.03125, %v1304_v42 }
 0x755   :  { %v1308_v45 = vadd.f32 1e-05, %v1306_v43 }
 0x757   :  { %1907 = vrsqrt.f32 %v1308_v45 }
 0x75d   :  { %v1906_v47 = vpop.eup %1905 }
 0x75e   :  { %v1311_v48 = vmul.f32 %v1906_v47, %v1295_v55 }
 0x760   :  { %v1319_v46 = vmul.f32 %v1580_v62, %v1311_v48 }
 0x761   :  { %v1908_v49 = vpop.eup %1907 }
 0x762   :  { %v1312_v50 = vmul.f32 %v1908_v49, %v1296_v32  ;;  %v1327_v53 = vadd.f32 %v1581_v10, %v1319_v46 }
 0x764   :  { %v1320_v51 = vmul.f32 %v1580_v62, %v1312_v50 }
 0x766   :  { %v1328_v54 = vadd.f32 %v1581_v10, %v1320_v51 }
 0x768   :  { %v1329_v56 = vpack.c.bf16 %v1328_v54, %v1327_v53 }
 0x76a   :  { %1769 = vmatmul.mubr.msk.bf16.vlgmr.msra.gmra.mrb[40].mxu1 %vm140_vm1, %v1329_v56 }
 0x83d   :  { %v1390_v60 = vpop.f32.mrb[40].mxu1 }
 0x83e   :  { %v1391_v61 = vadd.f32 %v1582_v59, %v1390_v60  ;;  %v1770_v63 = vpop.f32.mrb[41].mxu1 }
 0x83f   :  { %v1393_v1 = vpop.f32.mrb[42].mxu1 }
 0x840   :  { %v1394_v2 = vadd.f32 %v1582_v59, %v1393_v1  ;;  %v1771_v5 = vpop.f32.mrb[43].mxu1  ;;  %v1397_v6 = vmax.f32 %v1391_v61, 0.0 }
 0x842   :  { %v1398_v7 = vmax.f32 %v1394_v2, 0.0 }
 0x844   :  { %v1399_v15 = vpack.c.bf16 %v1398_v7, %v1397_v6 }
 0x846   :  { %1781 = vmatmul.mubr.msk.bf16.vlgmr.msra.gmra.mrb[36].mxu0 %vm1439_vm5, %v1399_v15 }
 0x919   :  { %v1477_v8 = vpop.f32.mrb[36].mxu0 }
 0x91a   :  { %v1478_v9 = vadd.f32 %v1586_v0, %v1477_v8  ;;  %v1782_v11 = vpop.f32.mrb[37].mxu0 }
 0x91b   :  { %v1480_v12 = vpop.f32.mrb[38].mxu0 }
 0x91c   :  { %v1481_v13 = vadd.f32 %v1586_v0, %v1480_v12  ;;  %v1783_v14 = vpop.f32.mrb[39].mxu0  ;;  %v1484_v16 = vadd.f32 %v1478_v9, %v1327_v53 }
 0x91e   :  { %v1488_v17 = vsel %vm140_vm1, %v1484_v16, 0.0  ;;  %v1485_v18 = vadd.f32 %v1481_v13, %v1328_v54 }
 0x91f   :  { %1489 = vadd.xlane.f32.xlu1 %v1488_v17 }
 0x920   :  { %v1491_v19 = vsel %vm140_vm1, %v1485_v18, 0.0 }
 0x921   :  { %1492 = vadd.xlane.f32.xlu0 %v1491_v19 }
 0x9ac   :  { %v1490_v44 = vpop.xlane.xlu1 %1489 }
 0x9ad   :  { %v1494_v52 = vmul.f32 0.03125, %v1490_v44 }
 0x9ae   :  { %v1493_v20 = vpop.xlane.xlu0 %1492 }
 0x9af   :  { %v1496_v21 = vsub.f32 %v1484_v16, %v1494_v52  ;;  %v1495_v22 = vmul.f32 0.03125, %v1493_v20 }
 0x9b1   :  { %v1497_v23 = vsub.f32 %v1485_v18, %v1495_v22  ;;  %v1498_v24 = vmul.f32 %v1496_v21, %v1496_v21 }
 0x9b3   :  { %v1500_v25 = vsel %vm140_vm1, %v1498_v24, 0.0  ;;  %v1499_v26 = vmul.f32 %v1497_v23, %v1497_v23 }
 0x9b4   :  { %1501 = vadd.xlane.f32.xlu1 %v1500_v25 }
 0x9b5   :  { %v1503_v27 = vsel %vm140_vm1, %v1499_v26, 0.0 }
 0x9b6   :  { %1504 = vadd.xlane.f32.xlu0 %v1503_v27 }
 0xa41   :  { %v1502_v28 = vpop.xlane.xlu1 %1501 }
 0xa42   :  { %v1506_v29 = vmul.f32 0.03125, %v1502_v28 }
 0xa43   :  { %v1505_v30 = vpop.xlane.xlu0 %1504 }
 0xa44   :  { %v1508_v55 = vadd.f32 1e-05, %v1506_v29  ;;  %v1507_v31 = vmul.f32 0.03125, %v1505_v30 }
 0xa46   :  { %1909 = vrsqrt.f32 %v1508_v55  ;;  %v1509_v32 = vadd.f32 1e-05, %v1507_v31 }
 0xa48   :  { %1911 = vrsqrt.f32 %v1509_v32 }
 0xa50   :  { %v1910_v33 = vpop.eup %1909 }
 0xa51   :  { %v1512_v35 = vmul.f32 %v1910_v33, %v1496_v21 }
 0xa52   :  { %v1912_v3 = vpop.eup %1911 }
 0xa53   :  { %v1520_v4 = vmul.f32 %v1592_v34, %v1512_v35  ;;  %v1513_v37 = vmul.f32 %v1912_v3, %v1497_v23 }
 0xa55   :  { %v1521_v38 = vmul.f32 %v1592_v34, %v1513_v37  ;;  %v1528_v39 = vadd.f32 %v1593_v36, %v1520_v4 }
 0xa57   :  { %v1529_v40 = vadd.f32 %v1593_v36, %v1521_v38  ;;  %1530 = vst.msk [vmem:[#allocation10] sm:$0xff] %vm140_vm1, %v1528_v39 }
 0xa59   :  { %1531 = vst.msk [vmem:[#allocation10 + $0x8] sm:$0xff] %vm140_vm1, %v1529_v40 }
 0xa5a   :  { %2012 = shalt.err (!%p2009_p8)
}
 0xa5b   :  { %s2013_s8 = scalar_lea.hbm %s2483_s16, 256 }
 0xa5c   :  { %p2014_p9 = scmp.ne.s32.totalorder %s2483_s16, %s2013_s8  ;;  %p2017_p10 = scmp.lt.u32.totalorder %s2013_s8, %s2483_s16 }
 0xa5e   :  { %p2019_p11 = pnand %p2017_p10, %p2014_p9 }
 0xa60   :  { %2022 = shalt.err (!%p2019_p11)
}
 0xa61   :  { %s2047_s30 = smov 128  }
 0xa62   :  { %1543 = dma.vmem_to_hbm [thread:$0]  %s1538_s5, 256, %s2483_s16, [#allocation4], %s2047_s30, %s2047_s30, %s2043_s20  }
 0xa63   :  { %2029 = dma.done.wait [#allocation4], 256  }
 0xa64   :  { %2030 = vsyncadd [#allocation4], 4294967040 }
 0xa65   :  { %1547 = vsyncpa [#allocation3], 1 }
 0xa66   :  { %1548 = vsyncpa [#allocation6], 1 }
 0xa67   :  { %1549 = vsyncpa [#allocation9], 1 }
 0xa68   :  { %1550 = vsyncpa [#allocation4], 1 }

// kernel: tpu_custom_call.1
= control target key start
LH: loop header
LB: loop body
LE: loop exit
PB: predicated region body
PF: predicated region fallthrough
CT: control target
= control target key end

     0   :  { %s2467_s0 = inlined_call_operand.vmem [shape: f32[2,8,32], index: 0, kind: input, shape index: {}]   ;;  %s2468_s1 = inlined_call_operand.vmem [shape: f32[2,16,32], index: 1, kind: input, shape index: {}]   ;;  %s2469_s2 = inlined_call_operand.hbm [shape: bf16[32,32], index: 2, kind: input, shape index: {}]   ;;  %s2470_s3 = inlined_call_operand.vmem [shape: f32[1,32], index: 3, kind: input, shape index: {}]   ;;  %s2471_s4 = inlined_call_operand.hbm [shape: bf16[32,64], index: 4, kind: input, shape index: {}]   ;;  %s2472_s5 = inlined_call_operand.vmem [shape: f32[1,64], index: 5, kind: input, shape index: {}]   ;;  %s2473_s6 = inlined_call_operand.hbm [shape: bf16[32,32], index: 6, kind: input, shape index: {}]   ;;  %s2474_s7 = inlined_call_operand.vmem [shape: f32[1,32], index: 7, kind: input, shape index: {}]   ;;  %s2475_s8 = inlined_call_operand.hbm [shape: bf16[32,64], index: 8, kind: input, shape index: {}]   ;;  %s2476_s9 = inlined_call_operand.vmem [shape: f32[1,64], index: 9, kind: input, shape index: {}]   ;;  %s2477_s10 = inlined_call_operand.vmem [shape: bf16[64,32], index: 10, kind: input, shape index: {}]   ;;  %s2478_s11 = inlined_call_operand.vmem [shape: f32[1,32], index: 11, kind: input, shape index: {}]   ;;  %s2479_s12 = inlined_call_operand.vmem [shape: f32[1,32], index: 12, kind: input, shape index: {}]   ;;  %s2480_s13 = inlined_call_operand.vmem [shape: f32[1,32], index: 13, kind: input, shape index: {}]   ;;  %s2481_s14 = inlined_call_operand.vmem [shape: f32[1,32], index: 14, kind: input, shape index: {}]   ;;  %s2482_s15 = inlined_call_operand.vmem [shape: f32[1,32], index: 15, kind: input, shape index: {}]   ;;  %s2483_s16 = inlined_call_operand.hbm [shape: f32[2,8,32], index: 16, kind: output, shape index: {}]  }
   0x1   :  { %2485 = sst [smem:[#allocation15_spill]] %s2467_s0 }
   0x2   :  { %21 = vsyncpa [#allocation3], 0 }
   0x3   :  { %22 = vsyncpa [#allocation6], 0 }
   0x4   :  { %23 = vsyncpa [#allocation9], 0 }
   0x5   :  { %24 = vsyncpa [#allocation4], 0  ;;  %s2031_s21 = smov [#allocation5]   ;;  %s2032_s23 = smov [#allocation2]  }
   0x6   :  { %s48_s22 = sshll.u32 %s2031_s21, 4  ;;  %s34_s24 = sshll.u32 %s2032_s23, 4  ;;  %s49_s22 = int_to_ptr.vmem [resolvable:$true] %s48_s22  ;;  %s2133_s24 = int_to_ptr.vmem [resolvable:$true] %s34_s24 }
   0x7   :  { %s1913_s27 = scalar_lea.hbm %s2471_s4, 256 }
   0x8   :  { %p1914_p0 = scmp.ne.s32.totalorder %s2471_s4, %s1913_s27  ;;  %p1917_p1 = scmp.lt.u32.totalorder %s1913_s27, %s2471_s4 }
   0xa   :  { %p1919_p2 = pnand %p1917_p1, %p1914_p0 }
   0xc   :  { %1922 = shalt.err (!%p1919_p2)
}
   0xd   :  { %s1923_s17 = scalar_lea.vmem %s49_s22, 256  ;;  %p1928_p4 = scmp.lt.s32.totalorder %s49_s22, %s49_s22 }
   0xe   :  { %p1924_p3 = scmp.ne.s32.totalorder %s49_s22, %s1923_s17  ;;  %p1929_p5 = scmp.lt.s32.totalorder %s1923_s17, %s1923_s17 }
  0x10   :  { %p1930_p6 = por %p1929_p5, %p1928_p4 }
  0x12   :  { %p1931_p7 = pnand %p1930_p6, %p1924_p3 }
  0x14   :  { %1934 = shalt.err (!%p1931_p7)
}
  0x15   :  { %s2033_s18 = smov 64   ;;  %s2034_s19 = smov 4  }
  0x16   :  { %54 = dma.hbm_to_vmem [thread:$0]  %s2471_s4, 256, %s49_s22, [#allocation6], %s2033_s18, %s2033_s18, %s2034_s19  }
  0x17   :  { %s1935_s26 = scalar_lea.hbm %s2469_s2, 256 }
  0x18   :  { %p1936_p8 = scmp.ne.s32.totalorder %s2469_s2, %s1935_s26  ;;  %p1939_p9 = scmp.lt.u32.totalorder %s1935_s26, %s2469_s2 }
  0x1a   :  { %p1941_p10 = pnand %p1939_p9, %p1936_p8 }
  0x1c   :  { %1944 = shalt.err (!%p1941_p10)
}
  0x1d   :  { %s1945_s0 = scalar_lea.vmem %s2133_s24, 256  ;;  %p1950_p12 = scmp.lt.s32.totalorder %s2133_s24, %s2133_s24 }
  0x1e   :  { %p1946_p11 = scmp.ne.s32.totalorder %s2133_s24, %s1945_s0  ;;  %p1951_p13 = scmp.lt.s32.totalorder %s1945_s0, %s1945_s0 }
  0x20   :  { %p1952_p0 = por %p1951_p13, %p1950_p12 }
  0x22   :  { %p1953_p1 = pnand %p1952_p0, %p1946_p11 }
  0x24   :  { %1956 = shalt.err (!%p1953_p1)
}
  0x25   :  { %40 = dma.hbm_to_vmem [thread:$0]  %s2469_s2, 256, %s2133_s24, [#allocation3], %s2033_s18, %s2033_s18, %s2034_s19  }
  0x26   :  { %s2035_s17 = smov [#allocation7]   ;;  %s2036_s21 = smov [#allocation8]  }
  0x27   :  { %s62_s20 = sshll.u32 %s2035_s17, 4  ;;  %s76_s23 = sshll.u32 %s2036_s21, 4  ;;  %s63_s20 = int_to_ptr.vmem [resolvable:$true] %s62_s20  ;;  %s2170_s23 = int_to_ptr.vmem [resolvable:$true] %s76_s23 }
  0x28   :  { %s1957_s27 = scalar_lea.hbm %s2473_s6, 256 }
  0x29   :  { %p1958_p2 = scmp.ne.s32.totalorder %s2473_s6, %s1957_s27  ;;  %p1961_p3 = scmp.lt.u32.totalorder %s1957_s27, %s2473_s6 }
  0x2b   :  { %p1963_p4 = pnand %p1961_p3, %p1958_p2 }
  0x2d   :  { %1966 = shalt.err (!%p1963_p4)
}
  0x2e   :  { %s1967_s2 = scalar_lea.vmem %s63_s20, 256  ;;  %p1972_p6 = scmp.lt.s32.totalorder %s63_s20, %s63_s20 }
  0x2f   :  { %p1968_p5 = scmp.ne.s32.totalorder %s63_s20, %s1967_s2  ;;  %p1973_p7 = scmp.lt.s32.totalorder %s1967_s2, %s1967_s2 }
  0x31   :  { %p1974_p8 = por %p1973_p7, %p1972_p6 }
  0x33   :  { %p1975_p9 = pnand %p1974_p8, %p1968_p5 }
  0x35   :  { %1978 = shalt.err (!%p1975_p9)
}
  0x36   :  { %68 = dma.hbm_to_vmem [thread:$0]  %s2473_s6, 256, %s63_s20, [#allocation6], %s2033_s18, %s2033_s18, %s2034_s19  }
  0x37   :  { %s1979_s21 = scalar_lea.hbm %s2475_s8, 256 }
  0x38   :  { %p1980_p10 = scmp.ne.s32.totalorder %s2475_s8, %s1979_s21  ;;  %p1983_p11 = scmp.lt.u32.totalorder %s1979_s21, %s2475_s8 }
  0x3a   :  { %p1985_p12 = pnand %p1983_p11, %p1980_p10 }
  0x3c   :  { %1988 = shalt.err (!%p1985_p12)
}
  0x3d   :  { %s1989_s29 = scalar_lea.vmem %s2170_s23, 256  ;;  %p1994_p0 = scmp.lt.s32.totalorder %s2170_s23, %s2170_s23 }
  0x3e   :  { %p1990_p13 = scmp.ne.s32.totalorder %s2170_s23, %s1989_s29  ;;  %p1995_p1 = scmp.lt.s32.totalorder %s1989_s29, %s1989_s29 }
  0x40   :  { %p1996_p2 = por %p1995_p1, %p1994_p0 }
  0x42   :  { %p1997_p3 = pnand %p1996_p2, %p1990_p13 }
  0x44   :  { %2000 = shalt.err (!%p1997_p3)
}
  0x45   :  { %82 = dma.hbm_to_vmem [thread:$0]  %s2475_s8, 256, %s2170_s23, [#allocation9], %s2033_s18, %s2033_s18, %s2034_s19  }
  0x46   :  { %2023 = dma.done.wait [#allocation3], 256  }
  0x47   :  { %2024 = vsyncadd [#allocation3], 4294967040 }
  0x48   :  { %2025 = dma.done.wait [#allocation6], 512  }
  0x49   :  { %2026 = vsyncadd [#allocation6], 4294966784 }
  0x4a   :  { %2027 = dma.done.wait [#allocation9], 256  }
  0x4b   :  { %2028 = vsyncadd [#allocation9], 4294967040  ;;  %v2037_v0 = vmov 0.0   ;;  %vm2038_vm0 = vmmov 0   ;;  %v1861_v1 = vld [vmem:[#allocation2] sm:$0xff]   ;;  %v1862_v2 = vld [vmem:[#allocation2 + $0x8] sm:$0xff]  }
  0x4c   :  { %1644 = vmatprep.subr.bf16.mxu1 %v2037_v0  ;;  %1648 = vmatprep.mubr.msk.bf16.mxu1 %vm2038_vm0, %v2037_v0  ;;  %s2486_s19 = sld [smem:[#allocation15_spill]]  ;;  %v1863_v5 = vld [vmem:[#allocation5] sm:$0xff]   ;;  %v112_v6 = vld [vmem:[%s2468_s1] sm:$0xff]  ;;  %v113_v8 = vld [vmem:[%s2468_s1 + $0x8] sm:$0xff]  ;;  %vm140_vm1 = vcmask 261120   ;;  %vm341_vm2 = vcmask 64512  }
  0x4d   :  { %1660 = vmatprep.subr.bf16.mxu0 %v2037_v0  ;;  %1662 = vmatprep.mubr.msk.bf16.mxu0 %vm2038_vm0, %v2037_v0  ;;  %v1864_v9 = vld [vmem:[#allocation5 + $0x8] sm:$0xff]   ;;  %v185_v10 = vpack.c.bf16 %v113_v8, %v112_v6  ;;  %v114_v11 = vld [vmem:[%s2468_s1 + $0x10] sm:$0xff]  ;;  %v1551_v14 = vld [vmem:[%s2470_s3] ss:$0 sm:$0xff]  ;;  %s2040_s3 = smov 112   ;;  %s2042_s6 = smov 96  }
  0x4e   :  { %1645 = vmatpush3.bf16.msra.mxu1 %v1861_v1  ;;  %v115_v12 = vld [vmem:[%s2468_s1 + $0x18] sm:$0xff]  ;;  %s2039_s1 = smov 120   ;;  %v1555_v23 = vld [vmem:[%s2472_s5] ss:$0 sm:$0xff]  ;;  %s2041_s5 = smov 104   ;;  %vm710_vm3 = vcmask 130048  }
  0x4f   :  { %1646 = vmatprep.subr.bf16.mxu1 %v2037_v0  ;;  %v186_v13 = vpack.c.bf16 %v115_v12, %v114_v11  ;;  %s2043_s20 = smov 8   ;;  %s2044_s8 = smov 16   ;;  %vm1211_vm4 = vcmask 195584   ;;  %vm1439_vm5 = vcmask 523264  }
  0x50   :  { %s2045_s18 = smov 24  }
  0x52   :  { %v2216_v3 = vld [vmem:[%s2486_s19] sm:$0xff]  ;;  %v2221_v4 = vld [vmem:[%s2486_s19 + $0x8] sm:$0xff]  ;;  %1647 = vmatpush3.bf16.msra.mxu1 %v1862_v2 }
  0x53   :  { %v116_v7 = vpack.c.bf16 %v2221_v4, %v2216_v3  ;;  %1652 = vmatprep.subr.bf16.mxu1 %v1863_v5 }
  0x55   :  { %1649 = vmatmul.mubr.msk.bf16.vlgmr.msra.gmra.mrb[0].mxu1 %vm140_vm1, %v116_v7 }
  0x56   :  { %1653 = vmatpush3.bf16.msra.mxu1 %v1863_v5  ;;  %1656 = vmatprep.mubr.msk.bf16.mxu1 %vm140_vm1, %v185_v10 }
  0x57   :  { %1654 = vmatprep.subr.bf16.mxu1 %v1864_v9 }
  0x5a   :  { %1655 = vmatpush3.bf16.msra.mxu1 %v1864_v9 }
  0x5b   :  { %1666 = vmatprep.subr.bf16.mxu1 %v2037_v0 }
  0x5d   :  { %1657 = vmatmul.mubr.msk.bf16.vlgmr.msra.gmra.mrb[4].mxu1 %vm140_vm1, %v186_v13 }
  0x5e   :  { %1668 = vmatprep.mubr.msk.bf16.mxu1 %vm2038_vm0, %v2037_v0 }
 0x128   :  { %v178_v15 = vpop.f32.mrb[0].mxu1 }
 0x129   :  { %v1650_v16 = vpop.f32.mrb[1].mxu1  ;;  %v179_v18 = vadd.f32 %v1551_v14, %v178_v15 }
 0x12a   :  { %v181_v17 = vpop.f32.mrb[2].mxu1 }
 0x12b   :  { %v182_v19 = vadd.f32 %v1551_v14, %v181_v17  ;;  %v1651_v20 = vpop.f32.mrb[3].mxu1  ;;  %v285_v38 = vpack.c.bf16 %v179_v18, %v179_v18 }
 0x12d   :  { %v1811_v21 = vpack.i.bf16 %v182_v19, %v179_v18  ;;  %v286_v37 = vpack.c.bf16 %v182_v19, %v182_v19 }
 0x12f   :  { %1812 = vrot.lane.b32.xlu1 %v1811_v21, %s2039_s1 }
 0x130   :  { %v1658_v22 = vpop.f32.mrb[4].mxu1 }
 0x131   :  { %v250_v24 = vpop.f32.mrb[5].mxu1  ;;  %v259_v26 = vadd.f32 %v1658_v22, %v1555_v23 }
 0x132   :  { %v1659_v25 = vpop.f32.mrb[6].mxu1  ;;  %v251_v29 = vadd.f32 %v1555_v23, %v250_v24 }
 0x133   :  { %v262_v27 = vadd.f32 %v1659_v25, %v1555_v23  ;;  %v253_v28 = vpop.f32.mrb[7].mxu1 }
 0x134   :  { %v254_v30 = vadd.f32 %v1555_v23, %v253_v28 }
 0x135   :  { %v334_v31 = vpack.c.bf16 %v262_v27, %v259_v26  ;;  %v1806_v32 = vpack.i.bf16 %v262_v27, %v259_v26 }
 0x136   :  { %v1821_v33 = vpack.i.bf16 %v254_v30, %v251_v29  ;;  %v333_v34 = vpack.c.bf16 %v254_v30, %v251_v29 }
 0x137   :  { %v392_v35 = vsel %vm341_vm2, %v334_v31, 0 }
 0x138   :  { %1667 = vmatpush3.bf16.xpose.msra.mxu1 %v392_v35  ;;  %1822 = vrot.lane.b32.xlu1 %v1821_v33, %s2040_s3  ;;  %v346_v36 = vsel %vm341_vm2, %v333_v34, 0 }
 0x139   :  { %1802 = vrot.lane.b32.xlu0 %v1821_v33, %s2039_s1  ;;  %1661 = vmatpush3.bf16.xpose.msra.mxu0 %v346_v36 }
 0x13a   :  { %1672 = vmatprep.subr.bf16.mxu0 %v2037_v0  ;;  %1678 = vmatprep.subr.bf16.mxu1 %v2037_v0 }
 0x13c   :  { %1827 = vrot.lane.b32.xlu1 %v1811_v21, %s2040_s3 }
 0x13d   :  { %1807 = vrot.lane.b32.xlu0 %v1806_v32, %s2039_s1 }
 0x13f   :  { %1669 = vmatmul.mubr.msk.bf16.vlgmr.msra.gmra.mrb[8].mxu1 %vm341_vm2, %v286_v37 }
 0x140   :  { %1837 = vrot.lane.b32.xlu1 %v1806_v32, %s2041_s5  ;;  %1663 = vmatmul.mubr.msk.bf16.vlgmr.msra.gmra.mrb[0].mxu0 %vm341_vm2, %v285_v38 }
 0x141   :  { %1817 = vrot.lane.b32.xlu0 %v1806_v32, %s2040_s3  ;;  %1674 = vmatprep.mubr.msk.bf16.mxu0 %vm2038_vm0, %v2037_v0  ;;  %s2046_s3 = smov [#allocation10]  }
 0x142   :  { %1680 = vmatprep.mubr.msk.bf16.mxu1 %vm2038_vm0, %v2037_v0 }
 0x144   :  { %855 = vrot.lane.b32.xlu1 %v334_v31, %s2042_s6 }
 0x145   :  { %1832 = vrot.lane.b32.xlu0 %v1821_v33, %s2041_s5 }
 0x149   :  { %1842 = vrot.lane.b32.xlu0 %v1811_v21, %s2041_s5  ;;  %s1537_s5 = sshll.u32 %s2046_s3, 4  ;;  %s1538_s5 = int_to_ptr.vmem [resolvable:$true] %s1537_s5 }
 0x14a   :  { %p2006_p5 = scmp.lt.s32.totalorder %s1538_s5, %s1538_s5 }
 0x14d   :  { %808 = vrot.lane.b32.xlu0 %v333_v34, %s2042_s6 }
 0x1a1   :  { %v1813_v39 = vpop.permute.xlu1 %1812 }
 0x1a2   :  { %v1814_v51 = vunpack.i.l.bf16 %v1813_v39  ;;  %v1815_v59 = vunpack.i.h.bf16 %v1813_v39 }
 0x1a4   :  { %v287_v60 = vpack.c.bf16 %v1814_v51, %v1814_v51  ;;  %v288_v6 = vpack.c.bf16 %v1815_v59, %v1815_v59 }
 0x1aa   :  { %v1823_v41 = vpop.permute.xlu1 %1822 }
 0x1ab   :  { %v1803_v40 = vpop.permute.xlu0 %1802  ;;  %v1825_v45 = vunpack.i.h.bf16 %v1823_v41  ;;  %v1824_v47 = vunpack.i.l.bf16 %v1823_v41 }
 0x1ac   :  { %v1805_v42 = vunpack.i.h.bf16 %v1803_v40  ;;  %v1804_v43 = vunpack.i.l.bf16 %v1803_v40 }
 0x1ad   :  { %v2269_v55 = vpack.c.bf16 %v1825_v45, %v1824_v47 }
 0x1ae   :  { %v2262_v44 = vpack.c.bf16 %v1805_v42, %v1804_v43  ;;  %v1828_v53 = vpop.permute.xlu1 %1827 }
 0x1af   :  { %v1808_v46 = vpop.permute.xlu0 %1807  ;;  %v530_v2 = vsel %vm341_vm2, %v2269_v55, 0  ;;  %v1829_v7 = vunpack.i.l.bf16 %v1828_v53  ;;  %v1830_v12 = vunpack.i.h.bf16 %v1828_v53 }
 0x1b0   :  { %v1810_v48 = vunpack.i.h.bf16 %v1808_v46  ;;  %v1809_v49 = vunpack.i.l.bf16 %v1808_v46  ;;  %v438_v50 = vsel %vm341_vm2, %v2262_v44, 0 }
 0x1b1   :  { %1673 = vmatpush3.bf16.xpose.msra.mxu0 %v438_v50  ;;  %v289_v13 = vpack.c.bf16 %v1829_v7, %v1829_v7  ;;  %v290_v17 = vpack.c.bf16 %v1830_v12, %v1830_v12 }
 0x1b2   :  { %v2266_v52 = vpack.c.bf16 %v1810_v48, %v1809_v49  ;;  %1684 = vmatprep.subr.bf16.mxu0 %v2037_v0  ;;  %v1838_v5 = vpop.permute.xlu1 %1837 }
 0x1b3   :  { %v1818_v54 = vpop.permute.xlu0 %1817  ;;  %v1840_v8 = vunpack.i.h.bf16 %v1838_v5  ;;  %v1839_v9 = vunpack.i.l.bf16 %v1838_v5 }
 0x1b4   :  { %v1820_v56 = vunpack.i.h.bf16 %v1818_v54  ;;  %v1819_v57 = vunpack.i.l.bf16 %v1818_v54  ;;  %v484_v58 = vsel %vm341_vm2, %v2266_v52, 0 }
 0x1b5   :  { %1679 = vmatpush3.bf16.xpose.msra.mxu1 %v484_v58  ;;  %v2290_v15 = vpack.c.bf16 %v1840_v8, %v1839_v9 }
 0x1b6   :  { %1690 = vmatprep.subr.bf16.mxu1 %v2037_v0  ;;  %v2274_v62 = vpack.c.bf16 %v1820_v56, %v1819_v57  ;;  %v856_v24 = vpop.permute.xlu1 %855 }
 0x1b7   :  { %v1833_v61 = vpop.permute.xlu0 %1832  ;;  %v668_v19 = vsel %vm341_vm2, %v2290_v15, 0 }
 0x1b8   :  { %v1835_v63 = vunpack.i.h.bf16 %v1833_v61  ;;  %v1834_v1 = vunpack.i.l.bf16 %v1833_v61  ;;  %1675 = vmatmul.mubr.msk.bf16.vlgmr.msra.gmra.mrb[4].mxu0 %vm341_vm2, %v287_v60  ;;  %v576_v11 = vsel %vm341_vm2, %v2274_v62, 0 }
 0x1b9   :  { %1685 = vmatpush3.bf16.xpose.msra.mxu0 %v530_v2  ;;  %1686 = vmatprep.mubr.msk.bf16.mxu0 %vm2038_vm0, %v2037_v0 }
 0x1ba   :  { %1696 = vmatprep.subr.bf16.mxu0 %v2037_v0  ;;  %v2282_v10 = vpack.c.bf16 %v1835_v63, %v1834_v1 }
 0x1bb   :  { %v1843_v14 = vpop.permute.xlu0 %1842 }
 0x1bc   :  { %1681 = vmatmul.mubr.msk.bf16.vlgmr.msra.gmra.mrb[12].mxu1 %vm341_vm2, %v288_v6  ;;  %v622_v16 = vsel %vm341_vm2, %v2282_v10, 0  ;;  %v1844_v18 = vunpack.i.l.bf16 %v1843_v14  ;;  %v1845_v20 = vunpack.i.h.bf16 %v1843_v14 }
 0x1bd   :  { %1691 = vmatpush3.bf16.xpose.msra.mxu1 %v576_v11  ;;  %1692 = vmatprep.mubr.msk.bf16.mxu1 %vm2038_vm0, %v2037_v0 }
 0x1be   :  { %1702 = vmatprep.subr.bf16.mxu1 %v2037_v0  ;;  %v291_v21 = vpack.c.bf16 %v1844_v18, %v1844_v18  ;;  %v292_v23 = vpack.c.bf16 %v1845_v20, %v1845_v20 }
 0x1bf   :  { %v809_v22 = vpop.permute.xlu0 %808 }
 0x1c0   :  { %1687 = vmatmul.mubr.msk.bf16.vlgmr.msra.gmra.mrb[8].mxu0 %vm341_vm2, %v289_v13 }
 0x1c1   :  { %1697 = vmatpush3.bf16.xpose.msra.mxu0 %v622_v16  ;;  %1698 = vmatprep.mubr.msk.bf16.mxu0 %vm2038_vm0, %v2037_v0 }
 0x1c2   :  { %1708 = vmatprep.subr.bf16.mxu0 %v2037_v0 }
 0x1c4   :  { %1693 = vmatmul.mubr.msk.bf16.vlgmr.msra.gmra.mrb[16].mxu1 %vm341_vm2, %v290_v17 }
 0x1c5   :  { %1703 = vmatpush3.bf16.xpose.msra.mxu1 %v668_v19  ;;  %1704 = vmatprep.mubr.msk.bf16.mxu1 %vm2038_vm0, %v2037_v0 }
 0x1c6   :  { %1714 = vmatprep.subr.bf16.mxu1 %v2037_v0 }
 0x1c8   :  { %1699 = vmatmul.mubr.msk.bf16.vlgmr.msra.gmra.mrb[12].mxu0 %vm341_vm2, %v291_v21 }
 0x1c9   :  { %1709 = vmatpush3.bf16.msra.mxu0 %v809_v22  ;;  %1710 = vmatprep.mubr.msk.bf16.mxu0 %vm2038_vm0, %v2037_v0 }
 0x1ca   :  { %1720 = vmatprep.subr.bf16.mxu0 %v2037_v0 }
 0x1cc   :  { %1705 = vmatmul.mubr.msk.bf16.vlgmr.msra.gmra.mrb[20].mxu1 %vm341_vm2, %v292_v23 }
 0x1cd   :  { %1715 = vmatpush3.bf16.msra.mxu1 %v856_v24  ;;  %1716 = vmatprep.mubr.msk.bf16.mxu1 %vm2038_vm0, %v2037_v0 }
 0x1ce   :  { %1726 = vmatprep.subr.bf16.mxu1 %v2037_v0 }
 0x212   :  { %v428_v25 = vpop.f32.mrb[8].mxu1 }
 0x213   :  { %v382_v26 = vpop.f32.mrb[0].mxu0  ;;  %v1670_v27 = vpop.f32.mrb[9].mxu1  ;;  %v714_v28 = vsel %vm710_vm3, %v428_v25, -inf }
 0x214   :  { %v431_v29 = vpop.f32.mrb[10].mxu1  ;;  %715 = vmax.xlane.f32.xlu0 %v714_v28  ;;  %v1664_v30 = vpop.f32.mrb[1].mxu0  ;;  %v711_v31 = vsel %vm710_vm3, %v382_v26, -inf }
 0x215   :  { %v1671_v32 = vpop.f32.mrb[11].mxu1  ;;  %712 = vmax.xlane.f32.xlu1 %v711_v31  ;;  %v385_v33 = vpop.f32.mrb[2].mxu0 }
 0x216   :  { %v1665_v34 = vpop.f32.mrb[3].mxu0 }
 0x28b   :  { %v474_v35 = vpop.f32.mrb[4].mxu0 }
 0x28c   :  { %v1676_v36 = vpop.f32.mrb[5].mxu0  ;;  %v717_v37 = vsel %vm710_vm3, %v474_v35, -inf }
 0x28d   :  { %718 = vmax.xlane.f32.xlu0 %v717_v37  ;;  %v477_v38 = vpop.f32.mrb[6].mxu0 }
 0x28e   :  { %v1677_v39 = vpop.f32.mrb[7].mxu0 }
 0x28f   :  { %v520_v40 = vpop.f32.mrb[12].mxu1 }
 0x290   :  { %v1682_v41 = vpop.f32.mrb[13].mxu1  ;;  %v720_v42 = vsel %vm710_vm3, %v520_v40, -inf }
 0x291   :  { %v523_v43 = vpop.f32.mrb[14].mxu1  ;;  %721 = vmax.xlane.f32.xlu1 %v720_v42 }
 0x292   :  { %v1683_v45 = vpop.f32.mrb[15].mxu1 }
 0x293   :  { %v2316_v46 = vpop.f32.mrb[8].mxu0 }
 0x294   :  { %v1688_v47 = vpop.f32.mrb[9].mxu0  ;;  %v723_v48 = vsel %vm710_vm3, %v2316_v46, -inf }
 0x295   :  { %724 = vmax.xlane.f32.xlu0 %v723_v48  ;;  %v569_v49 = vpop.f32.mrb[10].mxu0 }
 0x296   :  { %v1689_v50 = vpop.f32.mrb[11].mxu0 }
 0x297   :  { %v612_v51 = vpop.f32.mrb[16].mxu1 }
 0x298   :  { %v1694_v53 = vpop.f32.mrb[17].mxu1  ;;  %v726_v54 = vsel %vm710_vm3, %v612_v51, -inf }
 0x299   :  { %v615_v56 = vpop.f32.mrb[18].mxu1  ;;  %727 = vmax.xlane.f32.xlu1 %v726_v54 }
 0x29a   :  { %v1695_v57 = vpop.f32.mrb[19].mxu1 }
 0x29b   :  { %v2321_v58 = vpop.f32.mrb[12].mxu0 }
 0x29c   :  { %v1700_v59 = vpop.f32.mrb[13].mxu0  ;;  %v729_v60 = vsel %vm710_vm3, %v2321_v58, -inf }
 0x29d   :  { %730 = vmax.xlane.f32.xlu0 %v729_v60  ;;  %v661_v61 = vpop.f32.mrb[14].mxu0 }
 0x29e   :  { %v1701_v63 = vpop.f32.mrb[15].mxu0 }
 0x29f   :  { %v704_v1 = vpop.f32.mrb[20].mxu1 }
 0x2a0   :  { %v1706_v2 = vpop.f32.mrb[21].mxu1  ;;  %v732_v5 = vsel %vm710_vm3, %v704_v1, -inf }
 0x2a1   :  { %v707_v6 = vpop.f32.mrb[22].mxu1  ;;  %733 = vmax.xlane.f32.xlu1 %v732_v5  ;;  %v716_v11 = vpop.xlane.xlu0 %715 }
 0x2a2   :  { %v1707_v7 = vpop.f32.mrb[23].mxu1  ;;  %v713_v8 = vpop.xlane.xlu1 %712  ;;  %v736_v12 = vsub.f32 %v428_v25, %v716_v11 }
 0x2a3   :  { %v735_v9 = vsub.f32 %v382_v26, %v713_v8 }
 0x2a4   :  { %v745_v14 = vmul.f32 1.442695, %v736_v12 }
 0x2a5   :  { %v743_v13 = vmul.f32 1.442695, %v735_v9 }
 0x2a7   :  { %1873 = vpow2.f32 %v743_v13 }
 0x2a8   :  { %1875 = vpow2.f32 %v745_v14 }
 0x2b1   :  { %v1874_v16 = vpop.eup %1873 }
 0x2b2   :  { %902 = vrot.lane.b32.xlu1 %v2262_v44, %s2042_s6  ;;  %v759_v17 = vsel %vm710_vm3, %v1874_v16, 0.0  ;;  %v1876_v18 = vpop.eup %1875 }
 0x2b3   :  { %949 = vrot.lane.b32.xlu0 %v2266_v52, %s2042_s6  ;;  %v762_v19 = vsel %vm710_vm3, %v1876_v18, 0.0 }
 0x2d2   :  { %760 = vadd.xlane.f32.xlu0 %v759_v17 }
 0x2d6   :  { %763 = vadd.xlane.f32.xlu1 %v762_v19 }
 0x2e7   :  { %996 = vrot.lane.b32.xlu1 %v2269_v55, %s2042_s6 }
 0x31a   :  { %v719_v44 = vpop.xlane.xlu0 %718 }
 0x31b   :  { %v737_v52 = vsub.f32 %v474_v35, %v719_v44 }
 0x31d   :  { %v747_v20 = vmul.f32 1.442695, %v737_v52 }
 0x31e   :  { %v722_v21 = vpop.xlane.xlu1 %721 }
 0x31f   :  { %1877 = vpow2.f32 %v747_v20  ;;  %v738_v22 = vsub.f32 %v520_v40, %v722_v21 }
 0x321   :  { %v749_v23 = vmul.f32 1.442695, %v738_v22 }
 0x322   :  { %v725_v37 = vpop.xlane.xlu0 %724 }
 0x323   :  { %1879 = vpow2.f32 %v749_v23  ;;  %v739_v38 = vsub.f32 %v2316_v46, %v725_v37 }
 0x325   :  { %v751_v40 = vmul.f32 1.442695, %v739_v38 }
 0x326   :  { %v728_v24 = vpop.xlane.xlu1 %727 }
 0x327   :  { %v740_v25 = vsub.f32 %v612_v51, %v728_v24 }
 0x329   :  { %v1878_v26 = vpop.eup %1877  ;;  %v753_v27 = vmul.f32 1.442695, %v740_v25 }
 0x32a   :  { %v765_v28 = vsel %vm710_vm3, %v1878_v26, 0.0  ;;  %v731_v39 = vpop.xlane.xlu0 %730 }
 0x32b   :  { %1881 = vpow2.f32 %v753_v27  ;;  %766 = vadd.xlane.f32.xlu0 %v765_v28  ;;  %v741_v41 = vsub.f32 %v2321_v58, %v731_v39 }
 0x32d   :  { %v1880_v29 = vpop.eup %1879  ;;  %v755_v42 = vmul.f32 1.442695, %v741_v41 }
 0x32e   :  { %v734_v30 = vpop.xlane.xlu1 %733  ;;  %v768_v55 = vsel %vm710_vm3, %v1880_v29, 0.0  ;;  %v950_v43 = vpop.permute.xlu0 %949 }
 0x32f   :  { %v742_v31 = vsub.f32 %v704_v1, %v734_v30  ;;  %769 = vadd.xlane.f32.xlu1 %v768_v55 }
 0x331   :  { %v757_v32 = vmul.f32 1.442695, %v742_v31 }
 0x332   :  { %v903_v47 = vpop.permute.xlu1 %902 }
 0x333   :  { %1883 = vpow2.f32 %v757_v32 }
 0x334   :  { %1885 = vpow2.f32 %v751_v40 }
 0x335   :  { %v2336_v33 = vpop.eup %1881  ;;  %1887 = vpow2.f32 %v755_v42 }
 0x336   :  { %v774_v34 = vsel %vm710_vm3, %v2336_v33, 0.0 }
 0x337   :  { %775 = vadd.xlane.f32.xlu1 %v774_v34 }
 0x33d   :  { %v2340_v35 = vpop.eup %1883 }
 0x33e   :  { %v780_v36 = vsel %vm710_vm3, %v2340_v35, 0.0  ;;  %v2350_v45 = vpop.eup %1885 }
 0x33f   :  { %781 = vadd.xlane.f32.xlu1 %v780_v36  ;;  %v2354_v49 = vpop.eup %1887 }
 0x340   :  { %v777_v50 = vsel %vm710_vm3, %v2354_v49, 0.0 }
 0x341   :  { %1043 = vrot.lane.b32.xlu0 %v2274_v62, %s2042_s6  ;;  %v771_v62 = vsel %vm710_vm3, %v2350_v45, 0.0 }
 0x350   :  { %1090 = vrot.lane.b32.xlu1 %v2282_v10, %s2042_s6 }
 0x35f   :  { %v761_v48 = vpop.xlane.xlu0 %760 }
 0x360   :  { %1889 = vrcp.f32 %v761_v48  ;;  %772 = vadd.xlane.f32.xlu0 %v771_v62 }
 0x363   :  { %v764_v46 = vpop.xlane.xlu1 %763 }
 0x364   :  { %1891 = vrcp.f32 %v764_v46  ;;  %778 = vadd.xlane.f32.xlu0 %v777_v50  ;;  %v1866_v50 = vld [vmem:[#allocation7 + $0x8] sm:$0xff]  }
 0x367   :  { %v997_v58 = vpop.permute.xlu1 %996 }
 0x36a   :  { %v1890_v10 = vpop.eup %1889 }
 0x36b   :  { %v791_v51 = vmul.f32 %v1890_v10, %v1874_v16 }
 0x36d   :  { %v799_v53 = vpack.c.bf16 %v791_v51, %v791_v51 }
 0x36e   :  { %v1892_v54 = vpop.eup %1891 }
 0x36f   :  { %v792_v56 = vmul.f32 %v1892_v54, %v1876_v18  ;;  %1711 = vmatmul.mubr.msk.bf16.vlgmr.msra.gmra.mrb[16].mxu0 %vm710_vm3, %v799_v53 }
 0x370   :  { %1721 = vmatpush3.bf16.msra.mxu0 %v903_v47  ;;  %1722 = vmatprep.mubr.msk.bf16.mxu0 %vm2038_vm0, %v2037_v0  ;;  %v1865_v47 = vld [vmem:[#allocation7] sm:$0xff]  }
 0x371   :  { %v800_v57 = vpack.c.bf16 %v792_v56, %v792_v56  ;;  %1732 = vmatprep.subr.bf16.mxu0 %v2037_v0 }
 0x373   :  { %1717 = vmatmul.mubr.msk.bf16.vlgmr.msra.gmra.mrb[24].mxu1 %vm710_vm3, %v800_v57 }
 0x374   :  { %1727 = vmatpush3.bf16.msra.mxu1 %v950_v43  ;;  %1728 = vmatprep.mubr.msk.bf16.mxu1 %vm2038_vm0, %v2037_v0 }
 0x375   :  { %1738 = vmatprep.subr.bf16.mxu1 %v2037_v0 }
 0x37a   :  { %1137 = vrot.lane.b32.xlu0 %v2290_v15, %s2042_s6  ;;  %s2001_s6 = scalar_lea.vmem %s1538_s5, 256 }
 0x37b   :  { %p2002_p4 = scmp.ne.s32.totalorder %s1538_s5, %s2001_s6  ;;  %p2007_p6 = scmp.lt.s32.totalorder %s2001_s6, %s2001_s6 }
 0x37d   :  { %p2008_p7 = por %p2007_p6, %p2006_p5 }
 0x37f   :  { %p2009_p8 = pnand %p2008_p7, %p2002_p4 }
 0x3b8   :  { %v767_v59 = vpop.xlane.xlu0 %766 }
 0x3b9   :  { %1893 = vrcp.f32 %v767_v59 }
 0x3bc   :  { %v770_v60 = vpop.xlane.xlu1 %769  ;;  %v1044_v15 = vpop.permute.xlu0 %1043 }
 0x3bd   :  { %1895 = vrcp.f32 %v770_v60 }
 0x3c3   :  { %v1894_v61 = vpop.eup %1893 }
 0x3c4   :  { %v793_v63 = vmul.f32 %v1894_v61, %v1878_v26  ;;  %v776_v1 = vpop.xlane.xlu1 %775 }
 0x3c5   :  { %1897 = vrcp.f32 %v776_v1 }
 0x3c6   :  { %v801_v2 = vpack.c.bf16 %v793_v63, %v793_v63 }
 0x3c7   :  { %v1896_v5 = vpop.eup %1895 }
 0x3c8   :  { %v794_v6 = vmul.f32 %v1896_v5, %v1880_v29  ;;  %1723 = vmatmul.mubr.msk.bf16.vlgmr.msra.gmra.mrb[20].mxu0 %vm710_vm3, %v801_v2 }
 0x3c9   :  { %1733 = vmatpush3.bf16.msra.mxu0 %v997_v58  ;;  %1734 = vmatprep.mubr.msk.bf16.mxu0 %vm2038_vm0, %v2037_v0 }
 0x3ca   :  { %v802_v7 = vpack.c.bf16 %v794_v6, %v794_v6  ;;  %1744 = vmatprep.subr.bf16.mxu0 %v2037_v0 }
 0x3cc   :  { %1729 = vmatmul.mubr.msk.bf16.vlgmr.msra.gmra.mrb[28].mxu1 %vm710_vm3, %v802_v7  ;;  %v782_v12 = vpop.xlane.xlu1 %781 }
 0x3cd   :  { %1739 = vmatpush3.bf16.msra.mxu1 %v1044_v15  ;;  %1740 = vmatprep.mubr.msk.bf16.mxu1 %vm2038_vm0, %v2037_v0  ;;  %1899 = vrcp.f32 %v782_v12 }
 0x3ce   :  { %1750 = vmatprep.subr.bf16.mxu1 %v2037_v0 }
 0x3cf   :  { %v1898_v8 = vpop.eup %1897 }
 0x3d0   :  { %v796_v9 = vmul.f32 %v1898_v8, %v2336_v33  ;;  %v1091_v22 = vpop.permute.xlu1 %1090 }
 0x3d2   :  { %v804_v11 = vpack.c.bf16 %v796_v9, %v796_v9 }
 0x3d4   :  { %1741 = vmatmul.mubr.msk.bf16.vlgmr.msra.gmra.mrb[32].mxu1 %vm710_vm3, %v804_v11 }
 0x3d5   :  { %1752 = vmatprep.mubr.msk.bf16.mxu1 %vm2038_vm0, %v2037_v0 }
 0x3d7   :  { %v1900_v14 = vpop.eup %1899 }
 0x3d8   :  { %v798_v17 = vmul.f32 %v1900_v14, %v2340_v35 }
 0x3da   :  { %v806_v19 = vpack.c.bf16 %v798_v17, %v798_v17 }
 0x3ed   :  { %v773_v13 = vpop.xlane.xlu0 %772 }
 0x3ee   :  { %1901 = vrcp.f32 %v773_v13 }
 0x3f1   :  { %v779_v16 = vpop.xlane.xlu0 %778 }
 0x3f2   :  { %1903 = vrcp.f32 %v779_v16 }
 0x3f5   :  { %v1138_v18 = vpop.permute.xlu0 %1137 }
 0x3f6   :  { %1751 = vmatpush3.bf16.msra.mxu1 %v1138_v18 }
 0x3f7   :  { %1764 = vmatprep.subr.bf16.mxu1 %v2037_v0 }
 0x3f8   :  { %v1902_v44 = vpop.eup %1901 }
 0x3f9   :  { %v795_v52 = vmul.f32 %v1902_v44, %v2350_v45  ;;  %1753 = vmatmul.mubr.msk.bf16.vlgmr.msra.gmra.mrb[36].mxu1 %vm710_vm3, %v806_v19  ;;  %v1576_v19 = vld [vmem:[%s2474_s7] ss:$0 sm:$0xff] }
 0x3fa   :  { %1768 = vmatprep.mubr.msk.bf16.mxu1 %vm2038_vm0, %v2037_v0 }
 0x3fb   :  { %v803_v20 = vpack.c.bf16 %v795_v52, %v795_v52 }
 0x3fc   :  { %v1904_v21 = vpop.eup %1903 }
 0x3fd   :  { %1735 = vmatmul.mubr.msk.bf16.vlgmr.msra.gmra.mrb[24].mxu0 %vm710_vm3, %v803_v20  ;;  %v797_v23 = vmul.f32 %v1904_v21, %v2354_v49 }
 0x3fe   :  { %1745 = vmatpush3.bf16.msra.mxu0 %v1091_v22  ;;  %1746 = vmatprep.mubr.msk.bf16.mxu0 %vm2038_vm0, %v2037_v0 }
 0x3ff   :  { %1756 = vmatprep.subr.bf16.mxu0 %v2037_v0  ;;  %v805_v24 = vpack.c.bf16 %v797_v23, %v797_v23 }
 0x405   :  { %1747 = vmatmul.mubr.msk.bf16.vlgmr.msra.gmra.mrb[28].mxu0 %vm710_vm3, %v805_v24 }
 0x406   :  { %1760 = vmatprep.mubr.msk.bf16.mxu0 %vm2038_vm0, %v2037_v0  ;;  %1757 = vmatpush3.bf16.msra.mxu0 %v1865_v47 }
 0x407   :  { %1758 = vmatprep.subr.bf16.mxu0 %v2037_v0 }
 0x40a   :  { %1759 = vmatpush3.bf16.msra.mxu0 %v1866_v50 }
 0x40b   :  { %1772 = vmatprep.subr.bf16.mxu0 %v2037_v0 }
 0x442   :  { %v848_v25 = vpop.f32.mrb[16].mxu0 }
 0x443   :  { %v1712_v26 = vpop.f32.mrb[17].mxu0 }
 0x444   :  { %v851_v27 = vpop.f32.mrb[18].mxu0 }
 0x445   :  { %v1713_v28 = vpop.f32.mrb[19].mxu0 }
 0x446   :  { %v895_v29 = vpop.f32.mrb[24].mxu1 }
 0x447   :  { %v1718_v30 = vpop.f32.mrb[25].mxu1 }
 0x448   :  { %v898_v55 = vpop.f32.mrb[26].mxu1 }
 0x449   :  { %v1719_v31 = vpop.f32.mrb[27].mxu1 }
 0x49b   :  { %v942_v32 = vpop.f32.mrb[20].mxu0 }
 0x49c   :  { %v1724_v33 = vpop.f32.mrb[21].mxu0 }
 0x49d   :  { %v945_v34 = vpop.f32.mrb[22].mxu0 }
 0x49e   :  { %v1725_v35 = vpop.f32.mrb[23].mxu0 }
 0x49f   :  { %v989_v36 = vpop.f32.mrb[28].mxu1 }
 0x4a0   :  { %v1846_v37 = vpack.i.bf16 %v989_v36, %v942_v32  ;;  %v1730_v38 = vpop.f32.mrb[29].mxu1  ;;  %v1867_v36 = vld [vmem:[#allocation8] sm:$0xff]  }
 0x4a1   :  { %v992_v39 = vpop.f32.mrb[30].mxu1  ;;  %1765 = vmatpush3.bf16.msra.mxu1 %v1867_v36  ;;  %v1870_v38 = vld [vmem:[%s2477_s10 + $0x8] sm:$0xff]   ;;  %v1593_v36 = vld [vmem:[%s2482_s15] ss:$0 sm:$0xff] }
 0x4a2   :  { %v1731_v40 = vpop.f32.mrb[31].mxu1  ;;  %1847 = vrot.lane.b32.xlu1 %v1846_v37, %s2043_s20  ;;  %1766 = vmatprep.subr.bf16.mxu1 %v2037_v0  ;;  %v1869_v37 = vld [vmem:[%s2477_s10] sm:$0xff]  }
 0x4a7   :  { %v1083_v41 = vpop.f32.mrb[32].mxu1 }
 0x4a8   :  { %v1742_v42 = vpop.f32.mrb[33].mxu1 }
 0x4a9   :  { %v1086_v43 = vpop.f32.mrb[34].mxu1 }
 0x4aa   :  { %v1743_v45 = vpop.f32.mrb[35].mxu1 }
 0x4cc   :  { %v1177_v48 = vpop.f32.mrb[36].mxu1 }
 0x4cd   :  { %v1754_v62 = vpop.f32.mrb[37].mxu1 }
 0x4ce   :  { %v1180_v49 = vpop.f32.mrb[38].mxu1  ;;  %v1580_v62 = vld [vmem:[%s2479_s12] ss:$0 sm:$0xff] }
 0x4cf   :  { %v1755_v46 = vpop.f32.mrb[39].mxu1 }
 0x4d0   :  { %v1036_v10 = vpop.f32.mrb[24].mxu0 }
 0x4d1   :  { %v1851_v51 = vpack.i.bf16 %v1083_v41, %v1036_v10  ;;  %v1736_v53 = vpop.f32.mrb[25].mxu0  ;;  %v1581_v10 = vld [vmem:[%s2480_s13] ss:$0 sm:$0xff] }
 0x4d2   :  { %v1039_v54 = vpop.f32.mrb[26].mxu0 }
 0x4d3   :  { %1852 = vrot.lane.b32.xlu0 %v1851_v51, %s2044_s8  ;;  %v1737_v56 = vpop.f32.mrb[27].mxu0 }
 0x4d8   :  { %v1130_v57 = vpop.f32.mrb[28].mxu0 }
 0x4d9   :  { %v1856_v58 = vpack.i.bf16 %v1177_v48, %v1130_v57  ;;  %v1748_v59 = vpop.f32.mrb[29].mxu0  ;;  %v1871_v57 = vld [vmem:[%s2477_s10 + $0x10] sm:$0xff]  }
 0x4da   :  { %v1133_v60 = vpop.f32.mrb[30].mxu0  ;;  %v1582_v59 = vld [vmem:[%s2476_s9] ss:$0 sm:$0xff] }
 0x4db   :  { %1857 = vrot.lane.b32.xlu1 %v1856_v58, %s2045_s18  ;;  %v1749_v61 = vpop.f32.mrb[31].mxu0  ;;  %v1872_v58 = vld [vmem:[%s2477_s10 + $0x18] sm:$0xff]  }
 0x514   :  { %v1848_v63 = vpop.permute.xlu1 %1847 }
 0x515   :  { %v1850_v2 = vunpack.i.h.bf16 %v1848_v63  ;;  %v1849_v5 = vunpack.i.l.bf16 %v1848_v63 }
 0x517   :  { %v1208_v8 = vsel %vm341_vm2, %v895_v29, %v1850_v2  ;;  %v1207_v9 = vsel %vm341_vm2, %v848_v25, %v1849_v5 }
 0x545   :  { %v1853_v1 = vpop.permute.xlu0 %1852 }
 0x546   :  { %v1855_v6 = vunpack.i.h.bf16 %v1853_v1  ;;  %v1854_v7 = vunpack.i.l.bf16 %v1853_v1 }
 0x548   :  { %v1210_v13 = vsel %vm710_vm3, %v1208_v8, %v1855_v6  ;;  %v1209_v14 = vsel %vm710_vm3, %v1207_v9, %v1854_v7 }
 0x54d   :  { %v1858_v15 = vpop.permute.xlu1 %1857 }
 0x54e   :  { %v1860_v11 = vunpack.i.h.bf16 %v1858_v15  ;;  %v1859_v12 = vunpack.i.l.bf16 %v1858_v15 }
 0x550   :  { %v1213_v16 = vsel %vm1211_vm4, %v1210_v13, %v1860_v11  ;;  %v1212_v17 = vsel %vm1211_vm4, %v1209_v14, %v1859_v12 }
 0x551   :  { %v1214_v18 = vpack.c.bf16 %v1213_v16, %v1212_v17 }
 0x553   :  { %1761 = vmatmul.mubr.msk.bf16.vlgmr.msra.gmra.mrb[32].mxu0 %vm140_vm1, %v1214_v18 }
 0x554   :  { %1780 = vmatprep.mubr.msk.bf16.mxu0 %vm2038_vm0, %v2037_v0  ;;  %1773 = vmatpush3.bf16.msra.mxu0 %v1869_v37 }
 0x555   :  { %1774 = vmatprep.subr.bf16.mxu0 %v2037_v0 }
 0x558   :  { %1775 = vmatpush3.bf16.msra.mxu0 %v1870_v38 }
 0x559   :  { %1776 = vmatprep.subr.bf16.mxu0 %v2037_v0 }
 0x55c   :  { %1777 = vmatpush3.bf16.msra.mxu0 %v1871_v57 }
 0x55d   :  { %1778 = vmatprep.subr.bf16.mxu0 %v2037_v0  ;;  %v1586_v0 = vld [vmem:[%s2478_s11] ss:$0 sm:$0xff] }
 0x560   :  { %1779 = vmatpush3.bf16.msra.mxu0 %v1872_v58 }
 0x626   :  { %v1275_v44 = vpop.f32.mrb[32].mxu0 }
 0x627   :  { %v1276_v52 = vadd.f32 %v1576_v19, %v1275_v44  ;;  %v1762_v20 = vpop.f32.mrb[33].mxu0 }
 0x628   :  { %v1278_v21 = vpop.f32.mrb[34].mxu0 }
 0x629   :  { %v1279_v22 = vadd.f32 %v1576_v19, %v1278_v21  ;;  %v1763_v23 = vpop.f32.mrb[35].mxu0  ;;  %v1282_v24 = vadd.f32 %v1276_v52, %v2216_v3 }
 0x62b   :  { %v1286_v25 = vsel %vm140_vm1, %v1282_v24, 0.0  ;;  %v1283_v26 = vadd.f32 %v1279_v22, %v2221_v4  ;;  %v1868_v4 = vld [vmem:[#allocation8 + $0x8] sm:$0xff]  }
 0x62c   :  { %1287 = vadd.xlane.f32.xlu0 %v1286_v25  ;;  %1767 = vmatpush3.bf16.msra.mxu1 %v1868_v4 }
 0x62d   :  { %v1289_v27 = vsel %vm140_vm1, %v1283_v26, 0.0 }
 0x62e   :  { %1290 = vadd.xlane.f32.xlu1 %v1289_v27 }
 0x6b9   :  { %v1288_v28 = vpop.xlane.xlu0 %1287 }
 0x6ba   :  { %v1293_v29 = vmul.f32 0.03125, %v1288_v28 }
 0x6bb   :  { %v1291_v30 = vpop.xlane.xlu1 %1290 }
 0x6bc   :  { %v1295_v55 = vsub.f32 %v1282_v24, %v1293_v29  ;;  %v1294_v31 = vmul.f32 0.03125, %v1291_v30 }
 0x6be   :  { %v1296_v32 = vsub.f32 %v1283_v26, %v1294_v31  ;;  %v1297_v33 = vmul.f32 %v1295_v55, %v1295_v55 }
 0x6c0   :  { %v1299_v34 = vsel %vm140_vm1, %v1297_v33, 0.0  ;;  %v1298_v35 = vmul.f32 %v1296_v32, %v1296_v32 }
 0x6c1   :  { %1300 = vadd.xlane.f32.xlu0 %v1299_v34  ;;  %v1592_v34 = vld [vmem:[%s2481_s14] ss:$0 sm:$0xff] }
 0x6c2   :  { %v1302_v3 = vsel %vm140_vm1, %v1298_v35, 0.0 }
 0x6c5   :  { %1303 = vadd.xlane.f32.xlu0 %v1302_v3 }
 0x74e   :  { %v1301_v39 = vpop.xlane.xlu0 %1300 }
 0x74f   :  { %v1305_v40 = vmul.f32 0.03125, %v1301_v39 }
 0x751   :  { %v1307_v41 = vadd.f32 1e-05, %v1305_v40 }
 0x752   :  { %v1304_v42 = vpop.xlane.xlu0 %1303 }
 0x753   :  { %1905 = vrsqrt.f32 %v1307_v41  ;;  %v1306_v43 = vmul.f32 0.03125, %v1304_v42 }
 0x755   :  { %v1308_v45 = vadd.f32 1e-05, %v1306_v43 }
 0x757   :  { %1907 = vrsqrt.f32 %v1308_v45 }
 0x75d   :  { %v1906_v47 = vpop.eup %1905 }
 0x75e   :  { %v1311_v48 = vmul.f32 %v1906_v47, %v1295_v55 }
 0x760   :  { %v1319_v46 = vmul.f32 %v1580_v62, %v1311_v48 }
 0x761   :  { %v1908_v49 = vpop.eup %1907 }
 0x762   :  { %v1312_v50 = vmul.f32 %v1908_v49, %v1296_v32  ;;  %v1327_v53 = vadd.f32 %v1581_v10, %v1319_v46 }
 0x764   :  { %v1320_v51 = vmul.f32 %v1580_v62, %v1312_v50 }
 0x766   :  { %v1328_v54 = vadd.f32 %v1581_v10, %v1320_v51 }
 0x768   :  { %v1329_v56 = vpack.c.bf16 %v1328_v54, %v1327_v53 }
 0x76a   :  { %1769 = vmatmul.mubr.msk.bf16.vlgmr.msra.gmra.mrb[40].mxu1 %vm140_vm1, %v1329_v56 }
 0x83d   :  { %v1390_v60 = vpop.f32.mrb[40].mxu1 }
 0x83e   :  { %v1391_v61 = vadd.f32 %v1582_v59, %v1390_v60  ;;  %v1770_v63 = vpop.f32.mrb[41].mxu1 }
 0x83f   :  { %v1393_v1 = vpop.f32.mrb[42].mxu1 }
 0x840   :  { %v1394_v2 = vadd.f32 %v1582_v59, %v1393_v1  ;;  %v1771_v5 = vpop.f32.mrb[43].mxu1  ;;  %v1397_v6 = vmax.f32 %v1391_v61, 0.0 }
 0x842   :  { %v1398_v7 = vmax.f32 %v1394_v2, 0.0 }
 0x844   :  { %v1399_v15 = vpack.c.bf16 %v1398_v7, %v1397_v6 }
 0x846   :  { %1781 = vmatmul.mubr.msk.bf16.vlgmr.msra.gmra.mrb[36].mxu0 %vm1439_vm5, %v1399_v15 }
 0x919   :  { %v1477_v8 = vpop.f32.mrb[36].mxu0 }
 0x91a   :  { %v1478_v9 = vadd.f32 %v1586_v0, %v1477_v8  ;;  %v1782_v11 = vpop.f32.mrb[37].mxu0 }
 0x91b   :  { %v1480_v12 = vpop.f32.mrb[38].mxu0 }
 0x91c   :  { %v1481_v13 = vadd.f32 %v1586_v0, %v1480_v12  ;;  %v1783_v14 = vpop.f32.mrb[39].mxu0  ;;  %v1484_v16 = vadd.f32 %v1478_v9, %v1327_v53 }
 0x91e   :  { %v1488_v17 = vsel %vm140_vm1, %v1484_v16, 0.0  ;;  %v1485_v18 = vadd.f32 %v1481_v13, %v1328_v54 }
 0x91f   :  { %1489 = vadd.xlane.f32.xlu1 %v1488_v17 }
 0x920   :  { %v1491_v19 = vsel %vm140_vm1, %v1485_v18, 0.0 }
 0x921   :  { %1492 = vadd.xlane.f32.xlu0 %v1491_v19 }
 0x9ac   :  { %v1490_v44 = vpop.xlane.xlu1 %1489 }
 0x9ad   :  { %v1494_v52 = vmul.f32 0.03125, %v1490_v44 }
 0x9ae   :  { %v1493_v20 = vpop.xlane.xlu0 %1492 }
 0x9af   :  { %v1496_v21 = vsub.f32 %v1484_v16, %v1494_v52  ;;  %v1495_v22 = vmul.f32 0.03125, %v1493_v20 }
 0x9b1   :  { %v1497_v23 = vsub.f32 %v1485_v18, %v1495_v22  ;;  %v1498_v24 = vmul.f32 %v1496_v21, %v1496_v21 }
 0x9b3   :  { %v1500_v25 = vsel %vm140_vm1, %v1498_v24, 0.0  ;;  %v1499_v26 = vmul.f32 %v1497_v23, %v1497_v23 }
 0x9b4   :  { %1501 = vadd.xlane.f32.xlu1 %v1500_v25 }
 0x9b5   :  { %v1503_v27 = vsel %vm140_vm1, %v1499_v26, 0.0 }
 0x9b6   :  { %1504 = vadd.xlane.f32.xlu0 %v1503_v27 }
 0xa41   :  { %v1502_v28 = vpop.xlane.xlu1 %1501 }
 0xa42   :  { %v1506_v29 = vmul.f32 0.03125, %v1502_v28 }
 0xa43   :  { %v1505_v30 = vpop.xlane.xlu0 %1504 }
 0xa44   :  { %v1508_v55 = vadd.f32 1e-05, %v1506_v29  ;;  %v1507_v31 = vmul.f32 0.03125, %v1505_v30 }
 0xa46   :  { %1909 = vrsqrt.f32 %v1508_v55  ;;  %v1509_v32 = vadd.f32 1e-05, %v1507_v31 }
 0xa48   :  { %1911 = vrsqrt.f32 %v1509_v32 }
 0xa50   :  { %v1910_v33 = vpop.eup %1909 }
 0xa51   :  { %v1512_v35 = vmul.f32 %v1910_v33, %v1496_v21 }
 0xa52   :  { %v1912_v3 = vpop.eup %1911 }
 0xa53   :  { %v1520_v4 = vmul.f32 %v1592_v34, %v1512_v35  ;;  %v1513_v37 = vmul.f32 %v1912_v3, %v1497_v23 }
 0xa55   :  { %v1521_v38 = vmul.f32 %v1592_v34, %v1513_v37  ;;  %v1528_v39 = vadd.f32 %v1593_v36, %v1520_v4 }
 0xa57   :  { %v1529_v40 = vadd.f32 %v1593_v36, %v1521_v38  ;;  %1530 = vst.msk [vmem:[#allocation10] sm:$0xff] %vm140_vm1, %v1528_v39 }
 0xa59   :  { %1531 = vst.msk [vmem:[#allocation10 + $0x8] sm:$0xff] %vm140_vm1, %v1529_v40 }
 0xa5a   :  { %2012 = shalt.err (!%p2009_p8)
}
 0xa5b   :  { %s2013_s8 = scalar_lea.hbm %s2483_s16, 256 }
 0xa5c   :  { %p2014_p9 = scmp.ne.s32.totalorder %s2483_s16, %s2013_s8  ;;  %p2017_p10 = scmp.lt.u32.totalorder %s2013_s8, %s2483_s16 }
 0xa5e   :  { %p2019_p11 = pnand %p2017_p10, %p2014_p9 }
 0xa60   :  { %2022 = shalt.err (!%p2019_p11)
}
 0xa61   :  { %s2047_s30 = smov 128  }
 0xa62   :  { %1543 = dma.vmem_to_hbm [thread:$0]  %s1538_s5, 256, %s2483_s16, [#allocation4], %s2047_s30, %s2047_s30, %s2043_s20  }
 0xa63   :  { %2029 = dma.done.wait [#allocation4], 256  }
 0xa64   :  { %2030 = vsyncadd [#allocation4], 4294967040 }
 0xa65   :  { %1547 = vsyncpa [#allocation3], 1 }
 0xa66   :  { %1548 = vsyncpa [#allocation6], 1 }
 0xa67   :  { %1549 = vsyncpa [#allocation9], 1 }
 0xa68   :  { %1550 = vsyncpa [#allocation4], 1 }

</bundles_post_ra>
